<compile_context>
chip_gen: v7x
topology: tpu7x:2x2x1
jax: 0.10.0
libtpu: 0.0.40
codegen_flags: <defaults>
</compile_context>

<pallas_src>
import functools

import jax
import jax.numpy as jnp
from jax.experimental import pallas as pl
from jax.experimental.pallas import tpu as pltpu


_VMEM_LIMIT = 64 * 1024 * 1024  # explicit scoped-VMEM budget (>= default 32MiB)


def _cparams(sem):
    return pltpu.CompilerParams(dimension_semantics=sem,
                                vmem_limit_bytes=_VMEM_LIMIT)


# ----------------------------- Pallas kernels ------------------------------


def _ln_linear_kernel(x_ref, g_ref, bln_ref, w_ref, b_ref, o_ref, xn_ref,
                      *, eps, act):
    """o = act(LayerNorm(x) @ w + b).  LN hoisted: computed once per row-tile
    (j==0) into a bf16 VMEM scratch and reused across all column tiles."""
    @pl.when(pl.program_id(1) == 0)
    def _():
        x = x_ref[...].astype(jnp.float32)
        mu = jnp.mean(x, axis=-1, keepdims=True)
        var = jnp.mean((x - mu) ** 2, axis=-1, keepdims=True)
        xn = (x - mu) * jax.lax.rsqrt(var + eps)
        xn_ref[...] = (xn * g_ref[...] + bln_ref[...]).astype(jnp.bfloat16)

    y = jnp.dot(xn_ref[...], w_ref[...],
                preferred_element_type=jnp.float32) + b_ref[...]
    if act == "silu":
        y = y * jax.nn.sigmoid(y)
    o_ref[...] = y.astype(o_ref.dtype)


def _linear_residual_kernel(x_ref, w_ref, b_ref, r_ref, o_ref):
    """o = residual + x @ w + b, full-K block (no accumulator / k axis)."""
    y = jnp.dot(x_ref[...], w_ref[...], preferred_element_type=jnp.float32)
    o_ref[...] = (y + b_ref[...] + r_ref[...].astype(jnp.float32)
                  ).astype(o_ref.dtype)


def _mlp_kernel(x_ref, g_ref, bln_ref, w1_ref, b1_ref, w2_ref, b2_ref,
                o_ref, acc_ref, xn_ref, *, eps):
    """o = x + SiLU(LN(x) @ w1 + b1) @ w2 + b2, tiled over the 4D hidden dim.
    LN hoisted into a bf16 scratch at k==0; resident x block doubles as the
    residual in the epilogue (no duplicate residual DMA)."""
    k = pl.program_id(1)

    @pl.when(k == 0)
    def _():
        acc_ref[...] = jnp.zeros_like(acc_ref)
        x = x_ref[...].astype(jnp.float32)
        mu = jnp.mean(x, axis=-1, keepdims=True)
        var = jnp.mean((x - mu) ** 2, axis=-1, keepdims=True)
        xn = (x - mu) * jax.lax.rsqrt(var + eps)
        xn_ref[...] = (xn * g_ref[...] + bln_ref[...]).astype(jnp.bfloat16)

    mid = jnp.dot(xn_ref[...], w1_ref[...],
                  preferred_element_type=jnp.float32) + b1_ref[...]
    mid = mid * jax.nn.sigmoid(mid)          # SiLU (sigmoid -> EUP slot)
    acc_ref[...] += jnp.dot(mid.astype(jnp.bfloat16), w2_ref[...],
                            preferred_element_type=jnp.float32)

    @pl.when(k == pl.num_programs(1) - 1)
    def _():
        o_ref[...] = (acc_ref[...] + b2_ref[...]
                      + x_ref[...].astype(jnp.float32)).astype(o_ref.dtype)


def _head_kernel(x_ref, w_ref, b_ref, o_ref):
    """o = softmax(x @ w_head + b_head), K-tiled; accumulate directly into the
    resident output block (no scratch); exact divide for the final softmax."""
    k = pl.program_id(1)

    @pl.when(k == 0)
    def _():
        o_ref[...] = jnp.zeros_like(o_ref)

    o_ref[...] += jnp.dot(x_ref[...].astype(jnp.bfloat16), w_ref[...],
                          preferred_element_type=jnp.float32)

    @pl.when(k == pl.num_programs(1) - 1)
    def _():
        y = o_ref[...] + b_ref[...]
        m = jnp.max(y, axis=-1, keepdims=True)
        e = jnp.exp(y - m)
        o_ref[...] = (e / jnp.sum(e, axis=-1, keepdims=True)).astype(o_ref.dtype)


def _attn_kernel(q_ref, k_ref, v_ref, o_ref, *, scale):
    """Causal self-attention for one (batch, head) grid point.
    q/k/v blocks are carved per-head from the fused bf16 qkv slab."""
    q = q_ref[0]                                   # (S, Dh) bf16
    k = k_ref[0]
    v = v_ref[0]
    s = jax.lax.dot_general(q, k, (((1,), (1,)), ((), ())),
                            preferred_element_type=jnp.float32) * scale
    S = s.shape[0]
    row = jax.lax.broadcasted_iota(jnp.int32, (S, S), 0)
    col = jax.lax.broadcasted_iota(jnp.int32, (S, S), 1)
    s = jnp.where(col <= row, s, -1e30)
    m = jnp.max(s, axis=-1, keepdims=True)
    p = jnp.exp(s - m)
    p = p * pl.reciprocal(jnp.sum(p, axis=-1, keepdims=True), approx=True)
    o_ref[0] = jnp.dot(p.astype(jnp.bfloat16), v,
                       preferred_element_type=jnp.float32).astype(o_ref.dtype)


# ----------------------------- kernel wrappers ------------------------------


def ln_linear(x, g, b_ln, w, b, *, eps, act=None, tm=256, tn=256):
    M, D = x.shape
    N = w.shape[1]
    tm, tn = min(tm, M), min(tn, N)
    assert M % tm == 0 and N % tn == 0, "pad tokens to a multiple of the tile"
    return pl.pallas_call(
        functools.partial(_ln_linear_kernel, eps=eps, act=act),
        out_shape=jax.ShapeDtypeStruct((M, N), jnp.bfloat16),
        grid=(M // tm, N // tn),
        in_specs=[
            pl.BlockSpec((tm, D), lambda i, j: (i, 0)),
            pl.BlockSpec((1, D), lambda i, j: (0, 0)),
            pl.BlockSpec((1, D), lambda i, j: (0, 0)),
            pl.BlockSpec((D, tn), lambda i, j: (0, j)),
            pl.BlockSpec((1, tn), lambda i, j: (0, j)),
        ],
        out_specs=pl.BlockSpec((tm, tn), lambda i, j: (i, j)),
        scratch_shapes=[pltpu.VMEM((tm, D), jnp.bfloat16)],
        compiler_params=_cparams(("parallel", "arbitrary")),
    )(x, g.reshape(1, D), b_ln.reshape(1, D), w, b.reshape(1, N))


def linear_residual(x, w, b, res, *, tm=256, tn=256):
    M, K = x.shape
    N = w.shape[1]
    tm, tn = min(tm, M), min(tn, N)
    assert M % tm == 0 and N % tn == 0
    return pl.pallas_call(
        _linear_residual_kernel,
        out_shape=jax.ShapeDtypeStruct((M, N), jnp.float32),
        grid=(M // tm, N // tn),
        in_specs=[
            pl.BlockSpec((tm, K), lambda i, j: (i, 0)),
            pl.BlockSpec((K, tn), lambda i, j: (0, j)),
            pl.BlockSpec((1, tn), lambda i, j: (0, j)),
            pl.BlockSpec((tm, tn), lambda i, j: (i, j)),
        ],
        out_specs=pl.BlockSpec((tm, tn), lambda i, j: (i, j)),
        compiler_params=_cparams(("parallel", "parallel")),
    )(x, w, b.reshape(1, N), res)


def mlp_block(x, g, b_ln, w1, b1, w2, b2, *, eps, tm=256, th=256):
    M, D = x.shape
    Hd = w1.shape[1]
    tm, th = min(tm, M), min(th, Hd)
    assert M % tm == 0 and Hd % th == 0
    return pl.pallas_call(
        functools.partial(_mlp_kernel, eps=eps),
        out_shape=jax.ShapeDtypeStruct((M, D), jnp.float32),
        grid=(M // tm, Hd // th),
        in_specs=[
            pl.BlockSpec((tm, D), lambda i, k: (i, 0)),
            pl.BlockSpec((1, D), lambda i, k: (0, 0)),
            pl.BlockSpec((1, D), lambda i, k: (0, 0)),
            pl.BlockSpec((D, th), lambda i, k: (0, k)),
            pl.BlockSpec((1, th), lambda i, k: (0, k)),
            pl.BlockSpec((th, D), lambda i, k: (k, 0)),
            pl.BlockSpec((1, D), lambda i, k: (0, 0)),
        ],
        out_specs=pl.BlockSpec((tm, D), lambda i, k: (i, 0)),
        scratch_shapes=[pltpu.VMEM((tm, D), jnp.float32),
                        pltpu.VMEM((tm, D), jnp.bfloat16)],
        compiler_params=_cparams(("parallel", "arbitrary")),
    )(x, g.reshape(1, D), b_ln.reshape(1, D), w1, b1.reshape(1, Hd), w2,
      b2.reshape(1, D))


def head_softmax(x, w, b, *, tm=256, tk=512):
    M, K = x.shape
    N = w.shape[1]
    tm, tk = min(tm, M), min(tk, K)
    assert M % tm == 0 and K % tk == 0
    return pl.pallas_call(
        _head_kernel,
        out_shape=jax.ShapeDtypeStruct((M, N), jnp.float32),
        grid=(M // tm, K // tk),
        in_specs=[
            pl.BlockSpec((tm, tk), lambda i, k: (i, k)),
            pl.BlockSpec((tk, N), lambda i, k: (k, 0)),
            pl.BlockSpec((1, N), lambda i, k: (0, 0)),
        ],
        out_specs=pl.BlockSpec((tm, N), lambda i, k: (i, 0)),
        compiler_params=_cparams(("parallel", "arbitrary")),
    )(x, w, b.reshape(1, N))


def attention(qkv3, n_heads, scale):
    """qkv3: (B, S, 3D) bf16 slab -> (B, S, D) bf16 attention output."""
    B, S, D3 = qkv3.shape
    D = D3 // 3
    Dh = D // n_heads
    assert Dh % 128 == 0, "per-head blocks require Dh % 128 == 0"
    return pl.pallas_call(
        functools.partial(_attn_kernel, scale=scale),
        out_shape=jax.ShapeDtypeStruct((B, S, D), jnp.bfloat16),
        grid=(B, n_heads),
        in_specs=[
            pl.BlockSpec((1, S, Dh), lambda b, h: (b, 0, h)),
            pl.BlockSpec((1, S, Dh), lambda b, h: (b, 0, n_heads + h)),
            pl.BlockSpec((1, S, Dh), lambda b, h: (b, 0, 2 * n_heads + h)),
        ],
        out_specs=pl.BlockSpec((1, S, Dh), lambda b, h: (b, 0, h)),
        compiler_params=_cparams(("parallel", "parallel")),
    )(qkv3, qkv3, qkv3)


# ----------------------------- model (glue in JAX) -------------------------


def init_params(key, n_blocks, dim, n_heads, codebook_size):
    def w(k, shape, scale=0.02):
        # weights stored bf16 (halved DMA traffic, full-rate MXU)
        return (scale * jax.random.normal(k, shape, dtype=jnp.float32)
                ).astype(jnp.bfloat16)

    blocks = []
    for i in range(n_blocks):
        k = jax.random.fold_in(key, i)
        ks = jax.random.split(k, 4)
        blocks.append(dict(
            ln1_g=jnp.ones((dim,), jnp.float32),
            ln1_b=jnp.zeros((dim,), jnp.float32),
            ln2_g=jnp.ones((dim,), jnp.float32),
            ln2_b=jnp.zeros((dim,), jnp.float32),
            w_qkv=w(ks[0], (dim, 3 * dim)),
            b_qkv=jnp.zeros((3 * dim,), jnp.float32),
            w_o=w(ks[1], (dim, dim)),
            b_o=jnp.zeros((dim,), jnp.float32),
            w_mlp1=w(ks[2], (dim, 4 * dim)),
            b_mlp1=jnp.zeros((4 * dim,), jnp.float32),
            w_mlp2=w(ks[3], (4 * dim, dim)),
            b_mlp2=jnp.zeros((dim,), jnp.float32),
        ))
    kh = jax.random.fold_in(key, 1000)
    return dict(
        blocks=blocks,
        w_head=w(kh, (dim, codebook_size)),
        b_head=jnp.zeros((codebook_size,), jnp.float32),
        n_heads=n_heads,
        eps=1e-6,  # adaLN_eps
    )


def var_forward(x, params):
    """x: (B, S, D) -> (B, S, codebook_size) softmax probabilities."""
    B, S, D = x.shape
    H = params["n_heads"]
    Dh = D // H
    scale = 1.0 / (Dh ** 0.5)
    eps = params["eps"]

    h = x.reshape(B * S, D).astype(jnp.float32)   # residual stream stays f32
    for blk in params["blocks"]:
        # --- causal self-attention sublayer (LN fused into QKV proj) ---
        qkv = ln_linear(h, blk["ln1_g"], blk["ln1_b"],
                        blk["w_qkv"], blk["b_qkv"], eps=eps)      # bf16
        attn = attention(qkv.reshape(B, S, 3 * D), H, scale)       # bf16
        h = linear_residual(attn.reshape(B * S, D), blk["w_o"], blk["b_o"], h)

        # --- fused MLP sublayer: LN + W1 + SiLU + W2 + residual ---
        h = mlp_block(h, blk["ln2_g"], blk["ln2_b"],
                      blk["w_mlp1"], blk["b_mlp1"],
                      blk["w_mlp2"], blk["b_mlp2"], eps=eps)
        # dropout(p=0.1) is identity at inference

    probs = head_softmax(h, params["w_head"], params["b_head"])
    return probs.reshape(B, S, -1)


# ----------------------------- pure-JAX reference ---------------------------


def var_forward_ref(x, params):
    B, S, D = x.shape
    H = params["n_heads"]
    Dh = D // H
    scale = 1.0 / (Dh ** 0.5)
    eps = params["eps"]
    f32 = lambda t: t.astype(jnp.float32)

    def ln(t, g, b):
        mu = jnp.mean(t, axis=-1, keepdims=True)
        var = jnp.mean((t - mu) ** 2, axis=-1, keepdims=True)
        return (t - mu) * jax.lax.rsqrt(var + eps) * g + b

    h = x.astype(jnp.float32)
    mask = jnp.tril(jnp.ones((S, S), bool))
    for blk in params["blocks"]:
        hn = ln(h, blk["ln1_g"], blk["ln1_b"])
        qkv = hn @ f32(blk["w_qkv"]) + blk["b_qkv"]
        q, k, v = jnp.split(qkv, 3, axis=-1)
        q = q.reshape(B, S, H, Dh).transpose(0, 2, 1, 3)
        k = k.reshape(B, S, H, Dh).transpose(0, 2, 1, 3)
        v = v.reshape(B, S, H, Dh).transpose(0, 2, 1, 3)
        s = jnp.einsum("bhqd,bhkd->bhqk", q, k) * scale
        s = jnp.where(mask, s, -1e30)
        p = jax.nn.softmax(s, axis=-1)
        o = jnp.einsum("bhqk,bhkd->bhqd", p, v).transpose(0, 2, 1, 3).reshape(B, S, D)
        h = h + (o @ f32(blk["w_o"]) + blk["b_o"])
        hn = ln(h, blk["ln2_g"], blk["ln2_b"])
        mid = hn @ f32(blk["w_mlp1"]) + blk["b_mlp1"]
        mid = mid * jax.nn.sigmoid(mid)
        h = h + (mid @ f32(blk["w_mlp2"]) + blk["b_mlp2"])
    logits = h @ f32(params["w_head"]) + params["b_head"]
    return jax.nn.softmax(logits, axis=-1)


# ----------------------------- main -----------------------------------------

if __name__ == "__main__":
    # Small shapes consistent with the module's constructor (scaled down).
    # Dh = D/H = 128 keeps per-head qkv slices lane-aligned and the QK^T
    # contraction at full MXU depth.
    B, S = 2, 64
    DIM, HEADS, BLOCKS = 256, 2, 2
    CODEBOOK = 512

    key = jax.random.PRNGKey(0)
    kx, kp = jax.random.split(key)
    x = jax.random.normal(kx, (B, S, DIM), dtype=jnp.float32)
    params = init_params(kp, BLOCKS, DIM, HEADS, CODEBOOK)

    out = var_forward(x, params)
    out = jax.block_until_ready(out)

    ref = var_forward_ref(x, params)
    assert out.shape == (B, S, CODEBOOK)
    # Tolerances account for intentional bf16 MXU inputs / bf16 intermediate
    # activations + approx reciprocal inside attention (the reference runs the
    # same bf16-stored weights but in full f32 math).
    assert jnp.allclose(out, ref, rtol=3e-2, atol=2e-3), "mismatch vs JAX reference"
    assert jnp.allclose(jnp.sum(out, axis=-1), 1.0, atol=1e-3), "softmax rows != 1"

    print("KERNEL_OK")
</pallas_src>

<mosaic_0001>
module attributes {stable_mosaic.version = 11 : i64} {
  func.func @_ln_linear_kernel(%arg0: i32, %arg1: i32, %arg2: memref<128x256xf32, #tpu.memory_space<vmem>>, %arg3: memref<1x256xf32, #tpu.memory_space<vmem>>, %arg4: memref<1x256xf32, #tpu.memory_space<vmem>>, %arg5: memref<256x256xbf16, #tpu.memory_space<vmem>>, %arg6: memref<1x256xf32, #tpu.memory_space<vmem>>, %arg7: memref<128x256xbf16, #tpu.memory_space<vmem>>, %arg8: memref<128x256xbf16, #tpu.memory_space<vmem>>) attributes {dimension_semantics = [#tpu.dimension_semantics<parallel>, #tpu.dimension_semantics<arbitrary>], iteration_bounds = array<i64: 1, 3>, scalar_prefetch = 0 : i64, scratch_operands = 1 : i64, tpu.core_type = #tpu.core_type<tc>, window_params = [{transform_indices = @transform_0, window_bounds = array<i64: 128, 256>}, {pipeline_mode = #tpu.pipeline_mode<synchronous>, transform_indices = @transform_1, window_bounds = array<i64: 1, 256>}, {pipeline_mode = #tpu.pipeline_mode<synchronous>, transform_indices = @transform_2, window_bounds = array<i64: 1, 256>}, {transform_indices = @transform_3, window_bounds = array<i64: 256, 256>}, {transform_indices = @transform_4, window_bounds = array<i64: 1, 256>}, {transform_indices = @transform_5, window_bounds = array<i64: 128, 256>}]} {
    %c0_i32 = arith.constant 0 : i32
    %0 = arith.cmpi eq, %arg1, %c0_i32 : i32
    %1 = arith.extui %0 : i1 to i32
    %c0_i32_0 = arith.constant 0 : i32
    %2 = arith.cmpi ne, %1, %c0_i32_0 : i32
    scf.if %2 {
      %c0_8 = arith.constant 0 : index
      %c0_9 = arith.constant 0 : index
      %11 = vector.load %arg2[%c0_8, %c0_9] : memref<128x256xf32, #tpu.memory_space<vmem>>, vector<128x256xf32>
      %cst_10 = arith.constant dense<0.000000e+00> : vector<128xf32>
      %12 = vector.multi_reduction <add>, %11, %cst_10 [1] : vector<128x256xf32> to vector<128xf32>
      %13 = vector.shape_cast %12 : vector<128xf32> to vector<128x1xf32>
      %cst_11 = arith.constant 2.560000e+02 : f32
      %14 = vector.broadcast %cst_11 : f32 to vector<128x1xf32>
      %15 = arith.divf %13, %14 : vector<128x1xf32>
      %16 = vector.broadcast %15 : vector<128x1xf32> to vector<128x256xf32>
      %17 = arith.subf %11, %16 : vector<128x256xf32>
      %18 = arith.mulf %17, %17 : vector<128x256xf32>
      %cst_12 = arith.constant dense<0.000000e+00> : vector<128xf32>
      %19 = vector.multi_reduction <add>, %18, %cst_12 [1] : vector<128x256xf32> to vector<128xf32>
      %20 = vector.shape_cast %19 : vector<128xf32> to vector<128x1xf32>
      %cst_13 = arith.constant 2.560000e+02 : f32
      %21 = vector.broadcast %cst_13 : f32 to vector<128x1xf32>
      %22 = arith.divf %20, %21 : vector<128x1xf32>
      %23 = vector.broadcast %15 : vector<128x1xf32> to vector<128x256xf32>
      %24 = arith.subf %11, %23 : vector<128x256xf32>
      %cst_14 = arith.constant 9.99999997E-7 : f32
      %25 = vector.broadcast %cst_14 : f32 to vector<128x1xf32>
      %26 = arith.addf %22, %25 : vector<128x1xf32>
      %27 = math.rsqrt %26 : vector<128x1xf32>
      %28 = vector.broadcast %27 : vector<128x1xf32> to vector<128x256xf32>
      %29 = arith.mulf %24, %28 : vector<128x256xf32>
      %c0_15 = arith.constant 0 : index
      %c0_16 = arith.constant 0 : index
      %30 = vector.load %arg3[%c0_15, %c0_16] : memref<1x256xf32, #tpu.memory_space<vmem>>, vector<1x256xf32>
      %31 = vector.broadcast %30 : vector<1x256xf32> to vector<128x256xf32>
      %32 = arith.mulf %29, %31 : vector<128x256xf32>
      %c0_17 = arith.constant 0 : index
      %c0_18 = arith.constant 0 : index
      %33 = vector.load %arg4[%c0_17, %c0_18] : memref<1x256xf32, #tpu.memory_space<vmem>>, vector<1x256xf32>
      %34 = vector.broadcast %33 : vector<1x256xf32> to vector<128x256xf32>
      %35 = arith.addf %32, %34 : vector<128x256xf32>
      %36 = arith.truncf %35 : vector<128x256xf32> to vector<128x256xbf16>
      %c0_19 = arith.constant 0 : index
      %c0_20 = arith.constant 0 : index
      %37 = vector.load %arg8[%c0_19, %c0_20] : memref<128x256xbf16, #tpu.memory_space<vmem>>, vector<128x256xbf16>
      tpu.vector_store %arg8[%c0_19, %c0_20], %36 {strides = array<i32>} : memref<128x256xbf16, #tpu.memory_space<vmem>>, vector<128x256xbf16>,
    } else {
    }
    %c0 = arith.constant 0 : index
    %c0_1 = arith.constant 0 : index
    %3 = vector.load %arg8[%c0, %c0_1] : memref<128x256xbf16, #tpu.memory_space<vmem>>, vector<128x256xbf16>
    %c0_2 = arith.constant 0 : index
    %c0_3 = arith.constant 0 : index
    %4 = vector.load %arg5[%c0_2, %c0_3] : memref<256x256xbf16, #tpu.memory_space<vmem>>, vector<256x256xbf16>
    %cst = arith.constant dense<0.000000e+00> : vector<128x256xf32>
    %5 = tpu.matmul %3, %4, %cst {dimension_numbers = #tpu.dot_dimension_numbers<[1], [0], [0], [1], [0, 0, 1, 1], [], []>} : vector<128x256xbf16>, vector<256x256xbf16>, vector<128x256xf32> -> vector<128x256xf32>
    %c0_4 = arith.constant 0 : index
    %c0_5 = arith.constant 0 : index
    %6 = vector.load %arg6[%c0_4, %c0_5] : memref<1x256xf32, #tpu.memory_space<vmem>>, vector<1x256xf32>
    %7 = vector.broadcast %6 : vector<1x256xf32> to vector<128x256xf32>
    %8 = arith.addf %5, %7 : vector<128x256xf32>
    %9 = arith.truncf %8 : vector<128x256xf32> to vector<128x256xbf16>
    %c0_6 = arith.constant 0 : index
    %c0_7 = arith.constant 0 : index
    %10 = vector.load %arg7[%c0_6, %c0_7] : memref<128x256xbf16, #tpu.memory_space<vmem>>, vector<128x256xbf16>
    tpu.vector_store %arg7[%c0_6, %c0_7], %9 {strides = array<i32>} : memref<128x256xbf16, #tpu.memory_space<vmem>>, vector<128x256xbf16>,
    return
  }
  func.func @transform_0(%arg0: i32, %arg1: i32) -> (i32, i32) {
    %c0_i32 = arith.constant 0 : i32
    %c0_i32_0 = arith.constant 0 : i32
    return %arg0, %c0_i32 : i32, i32
  }
  func.func @transform_1(%arg0: i32, %arg1: i32) -> (i32, i32) {
    %c0_i32 = arith.constant 0 : i32
    %c0_i32_0 = arith.constant 0 : i32
    %c0_i32_1 = arith.constant 0 : i32
    return %c0_i32, %c0_i32_0 : i32, i32
  }
  func.func @transform_2(%arg0: i32, %arg1: i32) -> (i32, i32) {
    %c0_i32 = arith.constant 0 : i32
    %c0_i32_0 = arith.constant 0 : i32
    %c0_i32_1 = arith.constant 0 : i32
    return %c0_i32, %c0_i32_0 : i32, i32
  }
  func.func @transform_3(%arg0: i32, %arg1: i32) -> (i32, i32) {
    %c0_i32 = arith.constant 0 : i32
    %c0_i32_0 = arith.constant 0 : i32
    return %c0_i32, %arg1 : i32, i32
  }
  func.func @transform_4(%arg0: i32, %arg1: i32) -> (i32, i32) {
    %c0_i32 = arith.constant 0 : i32
    %c0_i32_0 = arith.constant 0 : i32
    return %c0_i32, %arg1 : i32, i32
  }
  func.func @transform_5(%arg0: i32, %arg1: i32) -> (i32, i32) {
    %c0_i32 = arith.constant 0 : i32
    return %arg0, %arg1 : i32, i32
  }
}

</mosaic_0001>

<bundles_post_ra>
// kernel: tpu_custom_call.1
= control target key start
LH: loop header
LB: loop body
LE: loop exit
PB: predicated region body
PF: predicated region fallthrough
CT: control target
= control target key end

     0   :  { %s2704_s0 = inlined_call_operand.hbm [shape: f32[128,256], index: 0, kind: input, shape index: {}]   ;;  %s2705_s1 = inlined_call_operand.hbm [shape: f32[1,256], index: 1, kind: input, shape index: {}]   ;;  %s2706_s2 = inlined_call_operand.hbm [shape: f32[1,256], index: 2, kind: input, shape index: {}]   ;;  %s2707_s3 = inlined_call_operand.hbm [shape: bf16[256,768], index: 3, kind: input, shape index: {}]   ;;  %s2708_s4 = inlined_call_operand.hbm [shape: f32[1,768], index: 4, kind: input, shape index: {}]   ;;  %s2709_s5 = inlined_call_operand.hbm [shape: bf16[128,768], index: 5, kind: output, shape index: {}]  }
   0x1   :  { %2726 = sst [smem:[#allocation22_spill]] %s2705_s1 }
   0x2   :  { %2727 = sst [smem:[#allocation23_spill]] %s2707_s3 }
   0x3   :  { %2728 = sst [smem:[#allocation24_spill]] %s2709_s5 }
   0x4   :  { %10 = vsyncpa [#allocation4], 0 }
   0x5   :  { %11 = vsyncpa [#allocation7], 0 }
   0x6   :  { %12 = vsyncpa [#allocation10], 0 }
   0x7   :  { %14 = vsyncpa [#allocation10 + $0x1], 0 }
   0x8   :  { %15 = vsyncpa [#allocation5], 0 }
   0x9   :  { %17 = vsyncpa [#allocation5 + $0x1], 0  ;;  %s1949_s18 = smov 0   ;;  %s1951_s19 = smov 0  }
   0xa   :  { %s1953_s20 = smov 0   ;;  %s1955_s21 = smov 0  }
   0xb   :  { %s1957_s22 = smov 0   ;;  %s1959_s23 = smov 0  }
   0xc LB: > { %2729 = sst [smem:[#allocation17_spill]] %s1883_s18  ;;  %s1980_s24 = sadd.s32 4294967295, %s1903_s23   ;;  %s1903_s23 = sphi %s1959_s23, %s23_s23   ;;  %s1899_s22 = sphi %s1957_s22, %s2772_s22   ;;  %s1895_s21 = sphi %s1955_s21, %s2771_s21   ;;  %s1891_s20 = sphi %s1953_s20, %s2770_s20   ;;  %s1887_s19 = sphi %s1951_s19, %s2769_s19   ;;  %s1883_s18 = sphi %s1949_s18, %s2768_s18  }
   0xd   : > { %2730 = sst [smem:[#allocation18_spill]] %s1903_s23  ;;  %s1359_s25 = sadd.s32 4294967294, %s1903_s23  }
   0xe   : > { %p117_p0 = scmp.ne.s32.totalorder %s1891_s20, %s1887_s19  ;;  %p118_p1 = scmp.eq.s32.totalorder %s1903_s23, 0 }
   0xf   : > { %p123_p2 = scmp.ne.s32.totalorder %s1887_s19, %s1883_s18  ;;  %p2710_p3 = scmp.eq.s32.totalorder %s1980_s24, 0 }
  0x10   : > { %p175_p4 = scmp.eq.s32.totalorder %s1980_s24, 2  ;;  %p1991_p5 = por %p118_p1, %p117_p0 }
  0x11   : > { %p181_p6 = scmp.eq.s32.totalorder %s1359_s25, 2  ;;  %p1997_p7 = por %p2710_p3, %p123_p2 }
  0x12   : > { %p2001_p8 = por %p175_p4, %p117_p0  ;;  %p1360_p10 = scmp.ge.s32.totalorder %s1903_s23, 1 }
  0x13   : > { %s2732_s28 = scalar_select %p1997_p7, 1, 0 }
  0x14   : > { %s2733_s29 = scalar_select %p2001_p8, 1, 0 }
  0x15   : > { %p2005_p9 = por %p181_p6, %p123_p2  ;;  %p188_p11 = scmp.lt.s32.totalorder %s1903_s23, 4 }
  0x16   : > { %s1905_s7 = smov [#allocation6]   ;;  %p1525_p13 = scmp.lt.s32.totalorder %s1903_s23, 3 }
  0x17   : > { %s2734_s30 = scalar_select %p2005_p9, 1, 0 }
  0x18   : > { %p2011_p12 = pnand %p1360_p10, %p188_p11  ;;  %s218_s8 = sshll.u32 %s1905_s7, 4  ;;  %s219_s8 = int_to_ptr.vmem [resolvable:$true] %s218_s8 }
  0x19   : > { %2735 = sst [smem:[#allocation19_spill]] %s2734_s30  ;;  %p2020_p1 = pnand %p1525_p13, %p1991_p5 }
  0x1a   : > { %s2736_s6 = scalar_select %p2011_p12, 1, 0 }
  0x1b   : > { %p1501_p0 = pneg %p2011_p12  ;;  %s32_s11 = sadd.s32 1, %s1899_s22 }
  0x1c   : > { %s2737_s9 = scalar_select %p2020_p1, 1, 0 }
  0x1d   : > { %p2026_p2 = pnand %p1501_p0, %p2710_p3  ;;  %p2031_p4 = scmp.ge.s32.totalorder %s32_s11, 3 }
  0x1e   : > { %s2740_s1 = sld [smem:[#allocation22_spill]] }
  0x1f   : > { %s2738_s10 = scalar_select %p2026_p2, 1, 0 }
  0x20   : > { %s2739_s12 = scalar_select %p2031_p4, 1, 0 }
  0x21   : > { %p2044_p6 = pneg %p2026_p2 }
  0x24   : > { %s1669_s16 = scalar_lea.hbm %s2740_s1, 32 }
  0x25   : > { %p1670_p5 = scmp.ne.s32.totalorder %s2740_s1, %s1669_s16  ;;  %p1676_p13 = scmp.lt.u32.totalorder %s1669_s16, %s2740_s1 }
  0x27   : > { %p1672_p10 = pnand %p2044_p6, %p1670_p5 }
  0x29   : > { %p1673_p11 = pneg %p1672_p10 }
  0x2b   : > { %p1678_p0 = pnand %p1676_p13, %p1673_p11 }
  0x2d   : > { %1681 = shalt.err (!%p1678_p0)
}
  0x2e   : > { %s1682_s14 = scalar_lea.vmem %s219_s8, 32  ;;  %p1690_p7 = scmp.lt.s32.totalorder %s219_s8, %s219_s8 }
  0x2f   : > { %p1683_p3 = scmp.ne.s32.totalorder %s219_s8, %s1682_s14  ;;  %p1691_p12 = scmp.lt.s32.totalorder %s1682_s14, %s1682_s14 }
  0x31   : > { %p1685_p9 = pnand %p1683_p3, %p2044_p6  ;;  %p1692_p1 = por %p1691_p12, %p1690_p7 }
  0x33   : > { %p1686_p8 = pneg %p1685_p9 }
  0x35   : > { %p1693_p4 = pnand %p1692_p1, %p1686_p8 }
  0x37   : > { %1696 = shalt.err (!%p1693_p4)
}
  0x38   : > { %1507 = dma.hbm_to_vmem [thread:$0]  (!%p2026_p2), %s2740_s1, 32, %s219_s8, [#allocation7]  }
  0x39   : > { %p2742_p3 = scmp.ne.s32.totalorder %s2739_s12, 0  ;;  %s2717_s26 = sand.u32 1, %s1891_s20  }
  0x3a   : > { %s1365_s25 = sshll.u32 %s2717_s26, 8  ;;  %s1432_s7 = sshll.u32 %s1899_s22, 7 }
  0x3b   : > { %s2774_s11 = smov (%p2742_p3, %s32_s11), 0  ;;  %s244_s14 = scalar_lea.vmem [#allocation9], %s1365_s25 }
  0x3c   : > { %2743 = sst [smem:[#allocation20_spill]] %s2774_s11  ;;  %s107_s16 = ssub.s32 %s1899_s22, %s2774_s11 }
  0x3d   : > { %p108_p7 = scmp.eq.s32.totalorder %s107_s16, 0  ;;  %s251_s15 = sshll.u32 %s244_s14, 4  ;;  %s2080_s15 = int_to_ptr.vmem [resolvable:$true] %s251_s15 }
  0x3e   : > { %s2744_s17 = sadd.s32 1, %s1891_s20  ;;  %s2746_s3 = sld [smem:[#allocation23_spill]] }
  0x3f   : > { %s2073_s13 = scalar_select %p108_p7, %s1891_s20, %s2744_s17  }
  0x40   : > { %s2747_s12 = sand.u32 1, %s1903_s23   ;;  %p2748_p9 = scmp.ne.s32.totalorder %s2737_s9, 0 }
  0x41   : > { %2745 = sst [smem:[#allocation21_spill]] %s2073_s13  ;;  %s2084_s26 = scalar_lea.sflag [#allocation10], %s2747_s12 }
  0x42   : > { %p2721_p12 = pneg %p2748_p9 }
  0x44   : > { %s2078_s8 = scalar_lea.hbm %s2746_s3, %s1432_s7  ;;  %s1702_s25 = scalar_lea.hbm %s2746_s3, 12288 }
  0x45   : > { %s1697_s16 = scalar_lea.hbm %s2078_s8, 4096  ;;  %p1703_p5 = scmp.lt.u32.totalorder %s2078_s8, %s2746_s3 }
  0x46   : > { %p1698_p8 = scmp.ne.s32.totalorder %s2078_s8, %s1697_s16  ;;  %p1704_p10 = scmp.lt.u32.totalorder %s1702_s25, %s1697_s16 }
  0x47   : > { %p1706_p13 = scmp.lt.u32.totalorder %s1697_s16, %s2078_s8 }
  0x48   : > { %p1700_p1 = pnand %p2721_p12, %p1698_p8  ;;  %p1705_p11 = por %p1704_p10, %p1703_p5 }
  0x4a   : > { %p1701_p4 = pneg %p1700_p1  ;;  %p1707_p0 = por %p1706_p13, %p1705_p11 }
  0x4c   : > { %p1708_p3 = pnand %p1707_p0, %p1701_p4 }
  0x4e   : > { %1711 = shalt.err (!%p1708_p3)
}
  0x4f   : > { %s1712_s17 = scalar_lea.vmem %s2080_s15, 4096  ;;  %s1906_s12 = smov [#allocation9]  }
  0x50   : > { %p1713_p7 = scmp.ne.s32.totalorder %s2080_s15, %s1712_s17  ;;  %s1717_s18 = sshll.u32 %s1906_s12, 4  ;;  %s1718_s18 = int_to_ptr.vmem [resolvable:$false] %s1717_s18 }
  0x51   : > { %s1719_s30 = scalar_lea.vmem %s1718_s18, 8192  ;;  %p1720_p2 = scmp.lt.s32.totalorder %s2080_s15, %s1718_s18 }
  0x52   : > { %p1715_p8 = pnand %p1713_p7, %p2721_p12  ;;  %p1721_p5 = scmp.lt.s32.totalorder %s1719_s30, %s1712_s17 }
  0x54   : > { %p1716_p1 = pneg %p1715_p8  ;;  %p1722_p10 = por %p1721_p5, %p1720_p2 }
  0x56   : > { %p1723_p11 = pnand %p1722_p10, %p1716_p1 }
  0x58   : > { %1726 = shalt.err (!%p1723_p11)
}
  0x59   : > { %s1907_s16 = smov 384   ;;  %s1908_s25 = smov 128  }
  0x5a   : > { %s1909_s7 = smov 8   ;;  %s1910_s14 = smov [#allocation3]  }
  0x5b   : > { %1514 = dma.hbm_to_vmem [thread:$0]  (!%p2748_p9), %s2078_s8, 4096, %s2080_s15, %s2084_s26, %s1907_s16, %s1908_s25, %s1909_s7  }
  0x5c   : > { %s204_s1 = sshll.u32 %s1910_s14, 4  ;;  %s1727_s17 = scalar_lea.hbm %s2704_s0, 4096  ;;  %s205_s1 = int_to_ptr.vmem [resolvable:$true] %s204_s1 }
  0x5d   : > { %p1728_p2 = scmp.ne.s32.totalorder %s2704_s0, %s1727_s17  ;;  %p1734_p0 = scmp.lt.u32.totalorder %s1727_s17, %s2704_s0 }
  0x5f   : > { %p1730_p4 = pnand %p1728_p2, %p2044_p6 }
  0x61   : > { %p1731_p13 = pneg %p1730_p4 }
  0x63   : > { %p1736_p3 = pnand %p1734_p0, %p1731_p13 }
  0x65   : > { %1739 = shalt.err (!%p1736_p3)
}
  0x66   : > { %s1740_s15 = scalar_lea.vmem %s205_s1, 4096  ;;  %p1748_p5 = scmp.lt.s32.totalorder %s205_s1, %s205_s1 }
  0x67   : > { %p1741_p7 = scmp.ne.s32.totalorder %s205_s1, %s1740_s15  ;;  %p1749_p10 = scmp.lt.s32.totalorder %s1740_s15, %s1740_s15 }
  0x69   : > { %p1743_p8 = pnand %p1741_p7, %p2044_p6  ;;  %p1750_p11 = por %p1749_p10, %p1748_p5 }
  0x6b   : > { %p1744_p1 = pneg %p1743_p8 }
  0x6d   : > { %p1751_p12 = pnand %p1750_p11, %p1744_p1 }
  0x6f   : > { %1754 = shalt.err (!%p1751_p12)
}
  0x70   : > { %s1911_s3 = smov 256   ;;  %s1912_s11 = smov 16  }
  0x71   : > { %p2749_p2 = scmp.ne.s32.totalorder %s2738_s10, 0  ;;  %s2750_s16 = sand.u32 1, %s1891_s20  }
  0x72   : > { %s1368_s25 = sshll.u32 %s2750_s16, 1  ;;  %s1913_s7 = smov [#allocation8]  }
  0x73   : > { %1504 = dma.hbm_to_vmem [thread:$0]  (!%p2749_p2), %s2704_s0, 4096, %s205_s1, [#allocation4], %s1911_s3, %s1911_s3, %s1912_s11  }
  0x74   : > { %s229_s14 = sshll.u32 %s1913_s7, 4  ;;  %s1433_s12 = sshll.u32 %s1899_s22, 5  ;;  %s230_s14 = int_to_ptr.vmem [resolvable:$true] %s229_s14 }
  0x75   : > { %s1755_s30 = scalar_lea.hbm %s2706_s2, 32 }
  0x76   : > { %p1756_p12 = scmp.ne.s32.totalorder %s2706_s2, %s1755_s30  ;;  %p1762_p0 = scmp.lt.u32.totalorder %s1755_s30, %s2706_s2 }
  0x78   : > { %p1758_p4 = pnand %p1756_p12, %p2044_p6 }
  0x7a   : > { %p1759_p13 = pneg %p1758_p4 }
  0x7c   : > { %p1764_p3 = pnand %p1762_p0, %p1759_p13 }
  0x7e   : > { %1767 = shalt.err (!%p1764_p3)
}
  0x7f   : > { %s1768_s1 = scalar_lea.vmem %s230_s14, 32  ;;  %p1776_p5 = scmp.lt.s32.totalorder %s230_s14, %s230_s14 }
  0x80   : > { %p1769_p7 = scmp.ne.s32.totalorder %s230_s14, %s1768_s1  ;;  %p1777_p10 = scmp.lt.s32.totalorder %s1768_s1, %s1768_s1 }
  0x82   : > { %p1771_p8 = pnand %p1769_p7, %p2044_p6  ;;  %p1778_p11 = por %p1777_p10, %p1776_p5 }
  0x84   : > { %p1772_p1 = pneg %p1771_p8 }
  0x86   : > { %p1779_p9 = pnand %p1778_p11, %p1772_p1 }
  0x88   : > { %1782 = shalt.err (!%p1779_p9)
}
  0x89   : > { %1510 = dma.hbm_to_vmem [thread:$0]  (!%p2749_p2), %s2706_s2, 32, %s230_s14, [#allocation7]  }
  0x8a   : > { %s2154_s8 = scalar_lea.hbm %s2708_s4, %s1433_s12  ;;  %s265_s27 = scalar_lea.vmem [#allocation11], %s1368_s25 }
  0x8b   : > { %s273_s16 = sshll.u32 %s265_s27, 4  ;;  %s1783_s7 = scalar_lea.hbm %s2154_s8, 32  ;;  %s274_s16 = int_to_ptr.vmem [resolvable:$true] %s273_s16 }
  0x8c   : > { %p1784_p6 = scmp.ne.s32.totalorder %s2154_s8, %s1783_s7  ;;  %p2751_p9 = scmp.ne.s32.totalorder %s2737_s9, 0 }
  0x8d   : > { %s1788_s17 = scalar_lea.hbm %s2708_s4, 96  ;;  %p1789_p2 = scmp.lt.u32.totalorder %s2154_s8, %s2708_s4 }
  0x8e   : > { %p2752_p12 = pneg %p2751_p9  ;;  %p1790_p0 = scmp.lt.u32.totalorder %s1788_s17, %s1783_s7 }
  0x8f   : > { %p1792_p7 = scmp.lt.u32.totalorder %s1783_s7, %s2154_s8 }
  0x90   : > { %p1786_p4 = pnand %p1784_p6, %p2752_p12  ;;  %p1791_p3 = por %p1790_p0, %p1789_p2 }
  0x92   : > { %p1787_p13 = pneg %p1786_p4  ;;  %p1793_p8 = por %p1792_p7, %p1791_p3 }
  0x94   : > { %p1794_p1 = pnand %p1793_p8, %p1787_p13 }
  0x96   : > { %1797 = shalt.err (!%p1794_p1)
}
  0x97   : > { %s1798_s25 = scalar_lea.vmem %s274_s16, 32  ;;  %p2753_p10 = pmov %p2752_p12 }
  0x98   : > { %p1799_p5 = scmp.ne.s32.totalorder %s274_s16, %s1798_s25  ;;  %s1914_s30 = smov [#allocation11]  }
  0x99   : > { %s1803_s15 = sshll.u32 %s1914_s30, 4  ;;  %s1804_s15 = int_to_ptr.vmem [resolvable:$false] %s1803_s15 }
  0x9a   : > { %p1801_p11 = pnand %p1799_p5, %p2753_p10  ;;  %s1805_s13 = scalar_lea.vmem %s1804_s15, 64 }
  0x9b   : > { %p1806_p12 = scmp.lt.s32.totalorder %s274_s16, %s1804_s15  ;;  %p1807_p4 = scmp.lt.s32.totalorder %s1805_s13, %s1798_s25 }
  0x9c   : > { %p1802_p6 = pneg %p1801_p11 }
  0x9d   : > { %p1808_p0 = por %p1807_p4, %p1806_p12 }
  0x9f   : > { %p1809_p2 = pnand %p1808_p0, %p1802_p6 }
  0xa1   : > { %1812 = shalt.err (!%p1809_p2)
}
  0xa2   : > { %1517 = dma.hbm_to_vmem [thread:$0]  (!%p2751_p9), %s2154_s8, 32, %s274_s16, %s2084_s26  }
  0xa3   : > { %p2754_p13 = scmp.ne.s32.totalorder %s2736_s6, 0 }
  0xa4   : > { %p2755_p3 = scmp.eq.s32.totalorder (!%p2754_p13), %s1980_s24, 0 }
  0xa5   : > { %282 = sbr.rel (%p2754_p13) target bundleno = 865 (0x361), region = 40 }
  0xac   : > { %1866 = dma.done.wait (%p2755_p3), [#allocation4], 4096   ;;  %p2756_p7 = pmov %p2755_p3 }
  0xad   : > { %p2757_p8 = pmov %p2755_p3 }
  0xae   : > { %1868 = vsyncadd (%p2756_p7), [#allocation4], 4294963200 }
  0xaf   : > { %1870 = dma.done.wait (%p2757_p8), [#allocation7], 64   ;;  %p2758_p1 = pmov %p2755_p3 }
  0xb0   : > { %s296_s9 = sand.u32 1, %s1980_s24   ;;  %s2188_s26 = sand.u32 1, %s1887_s19  }
  0xb1   : > { %1872 = vsyncadd (%p2758_p1), [#allocation7], 4294967232  ;;  %s1375_s6 = sshll.u32 %s2188_s26, 8  ;;  %s297_s1 = scalar_lea.sflag [#allocation10], %s296_s9 }
  0xb2   : > { %s2191_s23 = scalar_lea.vmem [#allocation9], %s1375_s6  ;;  %p2759_p9 = scmp.ne.s32.totalorder %s2732_s28, 0 }
  0xb4   : > { %1874 = dma.done.wait (%p2759_p9), %s297_s1, 4128  }
  0xb5   : > { %1876 = vsyncadd (%p2759_p9), %s297_s1, 4294963168  ;;  %s1376_s3 = sshll.u32 %s2188_s26, 1  ;;  %s1377_s5 = sshll.u32 %s2188_s26, 7 }
  0xb6   : > { %s2199_s11 = scalar_lea.vmem [#allocation11], %s1376_s3  ;;  %s2201_s8 = scalar_lea.vmem [#allocation12], %s1377_s5 }
  0xb7   : > { %p1378_p5 = scmp.ne.s32.totalorder %s1895_s21, 0 }
  0xb8   : > { %v2204_v0 = vld [vmem:[#allocation3] sm:$0xff] (!%p1378_p5)  ;;  %v2206_v1 = vld [vmem:[#allocation3 + $0x8] sm:$0xff] (!%p1378_p5)  ;;  %v2214_v5 = vld [vmem:[#allocation3 + $0x10] sm:$0xff] (!%p1378_p5) }
  0xb9   : > { %349 = sbr.rel (%p1378_p5) target bundleno = 541 (0x21d), region = 64  ;;  %v2208_v2 = vld [vmem:[#allocation3 + $0x20] sm:$0xff] (!%p1378_p5)  ;;  %v382_v3 = vadd.f32 (!%p1378_p5), %v2206_v1, %v2204_v0  ;;  %v2212_v4 = vld [vmem:[#allocation3 + $0x28] sm:$0xff] (!%p1378_p5)  ;;  %v2216_v6 = vld [vmem:[#allocation3 + $0x18] sm:$0xff] (!%p1378_p5) }
  0xba   : > { %v388_v7 = vadd.f32 (!%p1378_p5), %v2212_v4, %v2208_v2  ;;  %v2220_v8 = vld [vmem:[#allocation3 + $0x30] sm:$0xff] (!%p1378_p5)  ;;  %v2222_v9 = vld [vmem:[#allocation3 + $0x38] sm:$0xff] (!%p1378_p5)  ;;  %v385_v10 = vadd.f32 (!%p1378_p5), %v2216_v6, %v2214_v5  ;;  %v2228_v12 = vld [vmem:[#allocation3 + $0x40] sm:$0xff] (!%p1378_p5) }
  0xbb   : > { %383 = vadd.xlane.f32.xlu0 (!%p1378_p5), %v382_v3  ;;  %v391_v11 = vadd.f32 (!%p1378_p5), %v2222_v9, %v2220_v8  ;;  %v2230_v13 = vld [vmem:[#allocation3 + $0x48] sm:$0xff] (!%p1378_p5)  ;;  %v2232_v14 = vld [vmem:[#allocation3 + $0x50] sm:$0xff] (!%p1378_p5)  ;;  %v2234_v15 = vld [vmem:[#allocation3 + $0x58] sm:$0xff] (!%p1378_p5) }
  0xbc   : > { %389 = vadd.xlane.f32.xlu1 (!%p1378_p5), %v388_v7  ;;  %v394_v16 = vadd.f32 (!%p1378_p5), %v2230_v13, %v2228_v12  ;;  %v397_v17 = vadd.f32 (!%p1378_p5), %v2234_v15, %v2232_v14  ;;  %v2240_v18 = vld [vmem:[#allocation3 + $0x60] sm:$0xff] (!%p1378_p5)  ;;  %v2242_v19 = vld [vmem:[#allocation3 + $0x68] sm:$0xff] (!%p1378_p5)  ;;  %v2244_v20 = vld [vmem:[#allocation3 + $0x70] sm:$0xff] (!%p1378_p5) }
  0xbd   : > { %v2246_v21 = vld [vmem:[#allocation3 + $0x78] sm:$0xff] (!%p1378_p5)  ;;  %v400_v22 = vadd.f32 (!%p1378_p5), %v2242_v19, %v2240_v18  ;;  %v2252_v24 = vld [vmem:[#allocation3 + $0x80] sm:$0xff] (!%p1378_p5)  ;;  %v2254_v25 = vld [vmem:[#allocation3 + $0x88] sm:$0xff] (!%p1378_p5) }
  0xbe   : > { %v403_v23 = vadd.f32 (!%p1378_p5), %v2246_v21, %v2244_v20  ;;  %v2256_v26 = vld [vmem:[#allocation3 + $0x90] sm:$0xff] (!%p1378_p5)  ;;  %v2258_v27 = vld [vmem:[#allocation3 + $0x98] sm:$0xff] (!%p1378_p5)  ;;  %v406_v28 = vadd.f32 (!%p1378_p5), %v2254_v25, %v2252_v24  ;;  %v2264_v30 = vld [vmem:[#allocation3 + $0xa0] sm:$0xff] (!%p1378_p5) }
  0xbf   : > { %386 = vadd.xlane.f32.xlu0 (!%p1378_p5), %v385_v10  ;;  %v409_v29 = vadd.f32 (!%p1378_p5), %v2258_v27, %v2256_v26  ;;  %v2266_v31 = vld [vmem:[#allocation3 + $0xa8] sm:$0xff] (!%p1378_p5)  ;;  %v2268_v32 = vld [vmem:[#allocation3 + $0xb0] sm:$0xff] (!%p1378_p5)  ;;  %v2270_v33 = vld [vmem:[#allocation3 + $0xb8] sm:$0xff] (!%p1378_p5) }
  0xc0   : > { %392 = vadd.xlane.f32.xlu1 %v391_v11  ;;  %v412_v34 = vadd.f32 %v2266_v31, %v2264_v30  ;;  %v415_v35 = vadd.f32 %v2270_v33, %v2268_v32  ;;  %v2276_v36 = vld [vmem:[#allocation3 + $0xc0] sm:$0xff]  ;;  %v2278_v37 = vld [vmem:[#allocation3 + $0xc8] sm:$0xff]  ;;  %v2280_v38 = vld [vmem:[#allocation3 + $0xd0] sm:$0xff] }
  0xc1   : > { %v2282_v39 = vld [vmem:[#allocation3 + $0xd8] sm:$0xff]  ;;  %v418_v40 = vadd.f32 %v2278_v37, %v2276_v36  ;;  %v2288_v42 = vld [vmem:[#allocation3 + $0xe0] sm:$0xff]  ;;  %v2290_v43 = vld [vmem:[#allocation3 + $0xe8] sm:$0xff] }
  0xc2   : > { %v421_v41 = vadd.f32 %v2282_v39, %v2280_v38  ;;  %v2292_v44 = vld [vmem:[#allocation3 + $0xf0] sm:$0xff]  ;;  %v2294_v45 = vld [vmem:[#allocation3 + $0xf8] sm:$0xff]  ;;  %v424_v46 = vadd.f32 %v2290_v43, %v2288_v42 }
  0xc3   : > { %395 = vadd.xlane.f32.xlu0 %v394_v16  ;;  %v427_v47 = vadd.f32 %v2294_v45, %v2292_v44 }
  0xc4   : > { %398 = vadd.xlane.f32.xlu1 %v397_v17 }
  0xc7   : > { %401 = vadd.xlane.f32.xlu0 %v400_v22 }
  0xc8   : > { %404 = vadd.xlane.f32.xlu1 %v403_v23 }
  0xcb   : > { %407 = vadd.xlane.f32.xlu0 %v406_v28 }
  0xcc   : > { %410 = vadd.xlane.f32.xlu1 %v409_v29 }
  0xcf   : > { %413 = vadd.xlane.f32.xlu0 %v412_v34 }
  0xd0   : > { %416 = vadd.xlane.f32.xlu1 %v415_v35 }
  0xd3   : > { %419 = vadd.xlane.f32.xlu0 %v418_v40 }
  0xd4   : > { %422 = vadd.xlane.f32.xlu1 %v421_v41 }
  0xd7   : > { %425 = vadd.xlane.f32.xlu0 %v424_v46 }
  0xd8   : > { %428 = vadd.xlane.f32.xlu1 %v427_v47 }
 0x148   : > { %v384_v48 = vpop.xlane.xlu0 %383 }
 0x149   : > { %v431_v49 = vmul.f32 0.00390625, %v384_v48  ;;  %v390_v50 = vpop.xlane.xlu1 %389 }
 0x14a   : > { %v433_v51 = vmul.f32 0.00390625, %v390_v50 }
 0x14b   : > { %v2301_v52 = vsub.f32 %v2204_v0, %v431_v49  ;;  %v2304_v53 = vsub.f32 %v2206_v1, %v431_v49 }
 0x14c   : > { %v2307_v54 = vsub.f32 %v2208_v2, %v433_v51  ;;  %v2310_v55 = vsub.f32 %v2212_v4, %v433_v51  ;;  %v387_v56 = vpop.xlane.xlu0 %386 }
 0x14d   : > { %v432_v57 = vmul.f32 0.00390625, %v387_v56  ;;  %v393_v58 = vpop.xlane.xlu1 %392  ;;  %v479_v59 = vmul.f32 %v2301_v52, %v2301_v52  ;;  %v480_v60 = vmul.f32 %v2304_v53, %v2304_v53 }
 0x14e   : > { %v434_v61 = vmul.f32 0.00390625, %v393_v58  ;;  %v483_v62 = vmul.f32 %v2307_v54, %v2307_v54  ;;  %v484_v63 = vmul.f32 %v2310_v55, %v2310_v55 }
 0x14f   : > { %v2321_v0 = vsub.f32 %v2214_v5, %v432_v57  ;;  %v2324_v1 = vsub.f32 %v2216_v6, %v432_v57  ;;  %v511_v2 = vadd.f32 %v480_v60, %v479_v59 }
 0x150   : > { %v2327_v3 = vsub.f32 %v2220_v8, %v434_v61  ;;  %v2330_v4 = vsub.f32 %v2222_v9, %v434_v61  ;;  %v396_v7 = vpop.xlane.xlu0 %395  ;;  %v517_v16 = vadd.f32 %v484_v63, %v483_v62 }
 0x151   : > { %v435_v10 = vmul.f32 0.00390625, %v396_v7  ;;  %512 = vadd.xlane.f32.xlu0 %v511_v2  ;;  %v399_v11 = vpop.xlane.xlu1 %398  ;;  %v481_v17 = vmul.f32 %v2321_v0, %v2321_v0  ;;  %v482_v5 = vmul.f32 %v2324_v1, %v2324_v1 }
 0x152   : > { %v436_v6 = vmul.f32 0.00390625, %v399_v11  ;;  %v485_v22 = vmul.f32 %v2327_v3, %v2327_v3  ;;  %v486_v8 = vmul.f32 %v2330_v4, %v2330_v4 }
 0x153   : > { %v2341_v9 = vsub.f32 %v2228_v12, %v435_v10  ;;  %v2344_v23 = vsub.f32 %v2230_v13, %v435_v10  ;;  %v514_v28 = vadd.f32 %v482_v5, %v481_v17 }
 0x154   : > { %v2347_v29 = vsub.f32 %v2232_v14, %v436_v6  ;;  %v2350_v34 = vsub.f32 %v2234_v15, %v436_v6  ;;  %v402_v35 = vpop.xlane.xlu0 %401  ;;  %v520_v46 = vadd.f32 %v486_v8, %v485_v22 }
 0x155   : > { %v437_v40 = vmul.f32 0.00390625, %v402_v35  ;;  %518 = vadd.xlane.f32.xlu0 %v517_v16  ;;  %515 = vadd.xlane.f32.xlu1 %v514_v28  ;;  %v405_v41 = vpop.xlane.xlu1 %404  ;;  %v487_v12 = vmul.f32 %v2341_v9, %v2341_v9  ;;  %v488_v13 = vmul.f32 %v2344_v23, %v2344_v23 }
 0x156   : > { %v438_v47 = vmul.f32 0.00390625, %v405_v41  ;;  %v489_v14 = vmul.f32 %v2347_v29, %v2347_v29  ;;  %v490_v15 = vmul.f32 %v2350_v34, %v2350_v34 }
 0x157   : > { %v2361_v48 = vsub.f32 %v2240_v18, %v437_v40  ;;  %v2364_v49 = vsub.f32 %v2242_v19, %v437_v40  ;;  %v523_v50 = vadd.f32 %v488_v13, %v487_v12 }
 0x158   : > { %v2367_v51 = vsub.f32 %v2244_v20, %v438_v47  ;;  %v2370_v56 = vsub.f32 %v2246_v21, %v438_v47  ;;  %v408_v57 = vpop.xlane.xlu0 %407  ;;  %v526_v60 = vadd.f32 %v490_v15, %v489_v14 }
 0x159   : > { %v439_v58 = vmul.f32 0.00390625, %v408_v57  ;;  %521 = vadd.xlane.f32.xlu1 %v520_v46  ;;  %524 = vadd.xlane.f32.xlu0 %v523_v50  ;;  %v411_v59 = vpop.xlane.xlu1 %410  ;;  %v491_v18 = vmul.f32 %v2361_v48, %v2361_v48  ;;  %v492_v19 = vmul.f32 %v2364_v49, %v2364_v49 }
 0x15a   : > { %v440_v61 = vmul.f32 0.00390625, %v411_v59  ;;  %v493_v20 = vmul.f32 %v2367_v51, %v2367_v51  ;;  %v494_v21 = vmul.f32 %v2370_v56, %v2370_v56 }
 0x15b   : > { %v2381_v62 = vsub.f32 %v2252_v24, %v439_v58  ;;  %v2384_v63 = vsub.f32 %v2254_v25, %v439_v58  ;;  %v529_v2 = vadd.f32 %v492_v19, %v491_v18 }
 0x15c   : > { %v2387_v7 = vsub.f32 %v2256_v26, %v440_v61  ;;  %v2390_v10 = vsub.f32 %v2258_v27, %v440_v61  ;;  %v414_v11 = vpop.xlane.xlu0 %413  ;;  %v532_v5 = vadd.f32 %v494_v21, %v493_v20 }
 0x15d   : > { %v441_v16 = vmul.f32 0.00390625, %v414_v11  ;;  %527 = vadd.xlane.f32.xlu1 %v526_v60  ;;  %530 = vadd.xlane.f32.xlu0 %v529_v2  ;;  %v417_v17 = vpop.xlane.xlu1 %416  ;;  %v495_v24 = vmul.f32 %v2381_v62, %v2381_v62  ;;  %v496_v25 = vmul.f32 %v2384_v63, %v2384_v63 }
 0x15e   : > { %v442_v6 = vmul.f32 0.00390625, %v417_v17  ;;  %v497_v26 = vmul.f32 %v2387_v7, %v2387_v7  ;;  %v498_v27 = vmul.f32 %v2390_v10, %v2390_v10 }
 0x15f   : > { %v2401_v22 = vsub.f32 %v2264_v30, %v441_v16  ;;  %v2404_v8 = vsub.f32 %v2266_v31, %v441_v16  ;;  %v535_v28 = vadd.f32 %v496_v25, %v495_v24 }
 0x160   : > { %v2407_v35 = vsub.f32 %v2268_v32, %v442_v6  ;;  %v2410_v40 = vsub.f32 %v2270_v33, %v442_v6  ;;  %v420_v41 = vpop.xlane.xlu0 %419  ;;  %v538_v13 = vadd.f32 %v498_v27, %v497_v26  ;;  %v641_v26 = vlaneseq }
 0x161   : > { %v443_v46 = vmul.f32 0.00390625, %v420_v41  ;;  %533 = vadd.xlane.f32.xlu1 %v532_v5  ;;  %536 = vadd.xlane.f32.xlu0 %v535_v28  ;;  %v423_v12 = vpop.xlane.xlu1 %422  ;;  %v499_v30 = vmul.f32 %v2401_v22, %v2401_v22  ;;  %v500_v31 = vmul.f32 %v2404_v8, %v2404_v8 }
 0x162   : > { %v444_v47 = vmul.f32 0.00390625, %v423_v12  ;;  %v501_v32 = vmul.f32 %v2407_v35, %v2407_v35  ;;  %v502_v33 = vmul.f32 %v2410_v40, %v2410_v40 }
 0x163   : > { %v2421_v14 = vsub.f32 %v2276_v36, %v443_v46  ;;  %v2424_v15 = vsub.f32 %v2278_v37, %v443_v46  ;;  %v541_v50 = vadd.f32 %v500_v31, %v499_v30 }
 0x164   : > { %v2427_v57 = vsub.f32 %v2280_v38, %v444_v47  ;;  %v2430_v58 = vsub.f32 %v2282_v39, %v444_v47  ;;  %v426_v59 = vpop.xlane.xlu0 %425  ;;  %v544_v19 = vadd.f32 %v502_v33, %v501_v32 }
 0x165   : > { %v445_v60 = vmul.f32 0.00390625, %v426_v59  ;;  %539 = vadd.xlane.f32.xlu1 %v538_v13  ;;  %542 = vadd.xlane.f32.xlu0 %v541_v50  ;;  %v429_v18 = vpop.xlane.xlu1 %428  ;;  %v503_v36 = vmul.f32 %v2421_v14, %v2421_v14  ;;  %v504_v37 = vmul.f32 %v2424_v15, %v2424_v15  ;;  %v642_v13 = vshrl.u32 %v641_v26, 7 }
 0x166   : > { %v446_v61 = vmul.f32 0.00390625, %v429_v18  ;;  %v505_v38 = vmul.f32 %v2427_v57, %v2427_v57  ;;  %v506_v39 = vmul.f32 %v2430_v58, %v2430_v58  ;;  %v639_v18 = vld [vmem:[#allocation6] sm:$0x3] }
 0x167   : > { %v2441_v20 = vsub.f32 %v2288_v42, %v445_v60  ;;  %v2444_v21 = vsub.f32 %v2290_v43, %v445_v60  ;;  %v547_v2 = vadd.f32 %v504_v37, %v503_v36  ;;  %v643_v59 = vsub.s32 0, %v642_v13 }
 0x168   : > { %v2447_v11 = vsub.f32 %v2292_v44, %v446_v61  ;;  %v2450_v16 = vsub.f32 %v2294_v45, %v446_v61  ;;  %v550_v17 = vadd.f32 %v506_v39, %v505_v38  ;;  %v647_v60 = vsub.s32 1, %v642_v13  ;;  %v683_v38 = vld [vmem:[#allocation8] sm:$0x3] }
 0x169   : > { %545 = vadd.xlane.f32.xlu1 %v544_v19  ;;  %548 = vadd.xlane.f32.xlu0 %v547_v2  ;;  %v507_v5 = vmul.f32 %v2441_v20, %v2441_v20  ;;  %v508_v42 = vmul.f32 %v2444_v21, %v2444_v21 }
 0x16a   : > { %v509_v43 = vmul.f32 %v2447_v11, %v2447_v11  ;;  %v510_v24 = vmul.f32 %v2450_v16, %v2450_v16 }
 0x16b   : > { %v553_v44 = vadd.f32 %v508_v42, %v507_v5  ;;  %v2462_v5 = vrot.slane %v639_v18, %v647_v60 }
 0x16c   : > { %v556_v45 = vadd.f32 %v510_v24, %v509_v43 }
 0x16d   : > { %551 = vadd.xlane.f32.xlu1 %v550_v17  ;;  %554 = vadd.xlane.f32.xlu0 %v553_v44  ;;  %v2460_v17 = vrot.slane %v639_v18, %v643_v59  ;;  %v2464_v44 = vrot.slane %v683_v38, %v643_v59 }
 0x171   : > { %557 = vadd.xlane.f32.xlu1 %v556_v45 }
 0x1de   : > { %v513_v25 = vpop.xlane.xlu0 %512 }
 0x1df   : > { %v559_v6 = vmul.f32 0.00390625, %v513_v25 }
 0x1e1   : > { %v575_v27 = vadd.f32 1e-06, %v559_v6 }
 0x1e2   : > { %v516_v28 = vpop.xlane.xlu1 %515  ;;  %v519_v41 = vpop.xlane.xlu0 %518 }
 0x1e3   : > { %1589 = vrsqrt.f32 %v575_v27  ;;  %v560_v46 = vmul.f32 0.00390625, %v516_v28  ;;  %v561_v12 = vmul.f32 0.00390625, %v519_v41  ;;  %v2468_v41 = vrot.slane %v683_v38, %v647_v60 }
 0x1e5   : > { %v576_v30 = vadd.f32 1e-06, %v560_v46  ;;  %v577_v31 = vadd.f32 1e-06, %v561_v12 }
 0x1e6   : > { %v522_v47 = vpop.xlane.xlu1 %521  ;;  %v525_v32 = vpop.xlane.xlu0 %524 }
 0x1e7   : > { %1591 = vrsqrt.f32 %v576_v30  ;;  %v562_v33 = vmul.f32 0.00390625, %v522_v47  ;;  %v563_v50 = vmul.f32 0.00390625, %v525_v32 }
 0x1e8   : > { %1593 = vrsqrt.f32 %v577_v31 }
 0x1e9   : > { %v578_v19 = vadd.f32 1e-06, %v562_v33  ;;  %v579_v36 = vadd.f32 1e-06, %v563_v50 }
 0x1ea   : > { %v528_v37 = vpop.xlane.xlu1 %527  ;;  %v531_v61 = vpop.xlane.xlu0 %530 }
 0x1eb   : > { %1595 = vrsqrt.f32 %v578_v19  ;;  %v564_v39 = vmul.f32 0.00390625, %v528_v37  ;;  %v565_v2 = vmul.f32 0.00390625, %v531_v61 }
 0x1ec   : > { %1597 = vrsqrt.f32 %v579_v36 }
 0x1ed   : > { %v1590_v42 = vpop.eup %1589  ;;  %v580_v43 = vadd.f32 1e-06, %v564_v39  ;;  %v581_v24 = vadd.f32 1e-06, %v565_v2 }
 0x1ee   : > { %v607_v45 = vmul.f32 %v1590_v42, %v2301_v52  ;;  %v608_v25 = vmul.f32 %v1590_v42, %v2304_v53  ;;  %v534_v6 = vpop.xlane.xlu1 %533  ;;  %v537_v26 = vpop.xlane.xlu0 %536 }
 0x1ef   : > { %1599 = vrsqrt.f32 %v580_v43  ;;  %v566_v27 = vmul.f32 0.00390625, %v534_v6  ;;  %v567_v28 = vmul.f32 0.00390625, %v537_v26 }
 0x1f0   : > { %v651_v46 = vmul.f32 %v2460_v17, %v607_v45  ;;  %v652_v12 = vmul.f32 %v2462_v5, %v608_v25  ;;  %1601 = vrsqrt.f32 %v581_v24 }
 0x1f1   : > { %v1592_v13 = vpop.eup %1591  ;;  %v582_v30 = vadd.f32 1e-06, %v566_v27  ;;  %v583_v31 = vadd.f32 1e-06, %v567_v28 }
 0x1f2   : > { %v1594_v47 = vpop.eup %1593  ;;  %v695_v52 = vadd.f32 %v2464_v44, %v651_v46  ;;  %v609_v53 = vmul.f32 %v1592_v13, %v2321_v0  ;;  %v610_v32 = vmul.f32 %v1592_v13, %v2324_v1  ;;  %v540_v33 = vpop.xlane.xlu1 %539  ;;  %v696_v19 = vadd.f32 %v2468_v41, %v652_v12 }
 0x1f3   : > { %v543_v50 = vpop.xlane.xlu0 %542  ;;  %v611_v59 = vmul.f32 %v1594_v47, %v2307_v54  ;;  %v612_v60 = vmul.f32 %v1594_v47, %v2310_v55  ;;  %1603 = vrsqrt.f32 %v582_v30  ;;  %v568_v18 = vmul.f32 0.00390625, %v540_v33 }
 0x1f4   : > { %v653_v36 = vmul.f32 %v2460_v17, %v609_v53  ;;  %v654_v37 = vmul.f32 %v2462_v5, %v610_v32  ;;  %1605 = vrsqrt.f32 %v583_v31  ;;  %v569_v39 = vmul.f32 0.00390625, %v543_v50 }
 0x1f5   : > { %v1596_v61 = vpop.eup %1595  ;;  %v655_v0 = vmul.f32 %v2460_v17, %v611_v59  ;;  %v656_v1 = vmul.f32 %v2462_v5, %v612_v60  ;;  %v584_v38 = vadd.f32 1e-06, %v568_v18 }
 0x1f6   : > { %v1598_v2 = vpop.eup %1597  ;;  %v697_v54 = vadd.f32 %v2464_v44, %v653_v36  ;;  %v698_v55 = vadd.f32 %v2468_v41, %v654_v37  ;;  %v613_v42 = vmul.f32 %v1596_v61, %v2327_v3  ;;  %v614_v43 = vmul.f32 %v1596_v61, %v2330_v4  ;;  %v546_v24 = vpop.xlane.xlu1 %545 }
 0x1f7   : > { %v699_v45 = vadd.f32 %v2464_v44, %v655_v0  ;;  %v700_v25 = vadd.f32 %v2468_v41, %v656_v1  ;;  %v615_v6 = vmul.f32 %v1598_v2, %v2341_v9  ;;  %v616_v26 = vmul.f32 %v1598_v2, %v2344_v23  ;;  %v549_v31 = vpop.xlane.xlu0 %548 }
 0x1f8   : > { %v727_v27 = vpack.c.bf16 %v697_v54, %v695_v52  ;;  %v728_v28 = vpack.c.bf16 %v698_v55, %v696_v19  ;;  %v657_v46 = vmul.f32 %v2460_v17, %v613_v42  ;;  %v658_v12 = vmul.f32 %v2462_v5, %v614_v43 }
 0x1f9   : > { %v1600_v13 = vpop.eup %1599  ;;  %v659_v3 = vmul.f32 %v2460_v17, %v615_v6  ;;  %v660_v4 = vmul.f32 %v2462_v5, %v616_v26  ;;  %1607 = vrsqrt.f32 %v584_v38  ;;  %v585_v30 = vadd.f32 1e-06, %v569_v39 }
 0x1fa   : > { %v1602_v47 = vpop.eup %1601  ;;  %743 = vst [vmem:[#allocation2] sm:$0xff] %v727_v27  ;;  %744 = vst [vmem:[#allocation2 + $0x8] sm:$0xff] %v728_v28  ;;  %v701_v9 = vadd.f32 %v2464_v44, %v657_v46  ;;  %v702_v23 = vadd.f32 %v2468_v41, %v658_v12  ;;  %v617_v52 = vmul.f32 %v1600_v13, %v2347_v29  ;;  %v552_v37 = vpop.xlane.xlu1 %551  ;;  %v570_v0 = vmul.f32 0.00390625, %v546_v24 }
 0x1fb   : > { %v618_v53 = vmul.f32 %v1600_v13, %v2350_v34  ;;  %v703_v32 = vadd.f32 %v2464_v44, %v659_v3  ;;  %v704_v33 = vadd.f32 %v2468_v41, %v660_v4  ;;  %v619_v50 = vmul.f32 %v1602_v47, %v2361_v48  ;;  %v555_v55 = vpop.xlane.xlu0 %554 }
 0x1fc   : > { %v620_v59 = vmul.f32 %v1602_v47, %v2364_v49  ;;  %v729_v60 = vpack.c.bf16 %v701_v9, %v699_v45  ;;  %v730_v18 = vpack.c.bf16 %v702_v23, %v700_v25  ;;  %v661_v19 = vmul.f32 %v2460_v17, %v617_v52 }
 0x1fd   : > { %v662_v36 = vmul.f32 %v2462_v5, %v618_v53  ;;  %v1604_v61 = vpop.eup %1603  ;;  %v663_v29 = vmul.f32 %v2460_v17, %v619_v50  ;;  %1609 = vrsqrt.f32 %v585_v30  ;;  %v586_v26 = vadd.f32 1e-06, %v570_v0 }
 0x1fe   : > { %v664_v34 = vmul.f32 %v2462_v5, %v620_v59  ;;  %v1606_v1 = vpop.eup %1605  ;;  %745 = vst [vmem:[#allocation2 + $0x10] sm:$0xff] %v729_v60  ;;  %746 = vst [vmem:[#allocation2 + $0x18] sm:$0xff] %v730_v18  ;;  %v705_v48 = vadd.f32 %v2464_v44, %v661_v19  ;;  %v621_v38 = vmul.f32 %v1604_v61, %v2367_v51  ;;  %v571_v27 = vmul.f32 0.00390625, %v549_v31  ;;  %v558_v28 = vpop.xlane.xlu1 %557 }
 0x1ff   : > { %v706_v49 = vadd.f32 %v2468_v41, %v662_v36  ;;  %v622_v39 = vmul.f32 %v1604_v61, %v2370_v56  ;;  %v623_v2 = vmul.f32 %v1606_v1, %v2381_v62  ;;  %v624_v54 = vmul.f32 %v1606_v1, %v2384_v63 }
 0x200   : > { %v731_v42 = vpack.c.bf16 %v705_v48, %v703_v32  ;;  %v665_v24 = vmul.f32 %v2460_v17, %v621_v38  ;;  %v707_v25 = vadd.f32 %v2464_v44, %v663_v29  ;;  %v708_v6 = vadd.f32 %v2468_v41, %v664_v34 }
 0x201   : > { %v732_v43 = vpack.c.bf16 %v706_v49, %v704_v33  ;;  %v666_v45 = vmul.f32 %v2462_v5, %v622_v39  ;;  %v572_v62 = vmul.f32 0.00390625, %v552_v37  ;;  %v573_v63 = vmul.f32 0.00390625, %v555_v55 }
 0x202   : > { %747 = vst [vmem:[#allocation2 + $0x20] sm:$0xff] %v731_v42  ;;  %v709_v51 = vadd.f32 %v2464_v44, %v665_v24  ;;  %v667_v12 = vmul.f32 %v2460_v17, %v623_v2  ;;  %v668_v13 = vmul.f32 %v2462_v5, %v624_v54  ;;  %1611 = vrsqrt.f32 %v586_v26 }
 0x203   : > { %748 = vst [vmem:[#allocation2 + $0x28] sm:$0xff] %v732_v43  ;;  %v710_v56 = vadd.f32 %v2468_v41, %v666_v45  ;;  %v1608_v46 = vpop.eup %1607  ;;  %v587_v3 = vadd.f32 1e-06, %v571_v27  ;;  %v588_v9 = vadd.f32 1e-06, %v572_v62  ;;  %v574_v52 = vmul.f32 0.00390625, %v558_v28 }
 0x204   : > { %v733_v4 = vpack.c.bf16 %v709_v51, %v707_v25  ;;  %v625_v31 = vmul.f32 %v1608_v46, %v2387_v7  ;;  %v626_v47 = vmul.f32 %v1608_v46, %v2390_v10  ;;  %v589_v23 = vadd.f32 1e-06, %v573_v63 }
 0x205   : > { %v734_v30 = vpack.c.bf16 %v710_v56, %v708_v6  ;;  %1613 = vrsqrt.f32 %v587_v3  ;;  %v590_v50 = vadd.f32 1e-06, %v574_v52  ;;  %v711_v59 = vadd.f32 %v2464_v44, %v667_v12 }
 0x206   : > { %749 = vst [vmem:[#allocation2 + $0x30] sm:$0xff] %v733_v4  ;;  %v669_v53 = vmul.f32 %v2460_v17, %v625_v31  ;;  %v670_v32 = vmul.f32 %v2462_v5, %v626_v47  ;;  %1615 = vrsqrt.f32 %v588_v9  ;;  %v712_v60 = vadd.f32 %v2468_v41, %v668_v13 }
 0x207   : > { %750 = vst [vmem:[#allocation2 + $0x38] sm:$0xff] %v734_v30  ;;  %v1610_v33 = vpop.eup %1609  ;;  %1617 = vrsqrt.f32 %v589_v23 }
 0x208   : > { %v713_v7 = vadd.f32 %v2464_v44, %v669_v53  ;;  %v714_v10 = vadd.f32 %v2468_v41, %v670_v32  ;;  %v627_v18 = vmul.f32 %v1610_v33, %v2401_v22  ;;  %v628_v19 = vmul.f32 %v1610_v33, %v2404_v8 }
 0x209   : > { %1619 = vrsqrt.f32 %v590_v50 }
 0x20a   : > { %v735_v36 = vpack.c.bf16 %v713_v7, %v711_v59  ;;  %v736_v37 = vpack.c.bf16 %v714_v10, %v712_v60  ;;  %v671_v29 = vmul.f32 %v2460_v17, %v627_v18  ;;  %v672_v34 = vmul.f32 %v2462_v5, %v628_v19 }
 0x20c   : > { %751 = vst [vmem:[#allocation2 + $0x40] sm:$0xff] %v735_v36  ;;  %752 = vst [vmem:[#allocation2 + $0x48] sm:$0xff] %v736_v37  ;;  %v1612_v61 = vpop.eup %1611  ;;  %v715_v2 = vadd.f32 %v2464_v44, %v671_v29  ;;  %v716_v54 = vadd.f32 %v2468_v41, %v672_v34 }
 0x20d   : > { %v629_v0 = vmul.f32 %v1612_v61, %v2407_v35  ;;  %v630_v1 = vmul.f32 %v1612_v61, %v2410_v40 }
 0x20f   : > { %v1614_v48 = vpop.eup %1613  ;;  %v673_v22 = vmul.f32 %v2460_v17, %v629_v0  ;;  %v674_v8 = vmul.f32 %v2462_v5, %v630_v1 }
 0x210   : > { %v631_v49 = vmul.f32 %v1614_v48, %v2421_v14  ;;  %v632_v38 = vmul.f32 %v1614_v48, %v2424_v15  ;;  %v1616_v39 = vpop.eup %1615 }
 0x211   : > { %v717_v55 = vadd.f32 %v2464_v44, %v673_v22  ;;  %v718_v35 = vadd.f32 %v2468_v41, %v674_v8  ;;  %v1618_v43 = vpop.eup %1617  ;;  %v633_v24 = vmul.f32 %v1616_v39, %v2427_v57  ;;  %v634_v14 = vmul.f32 %v1616_v39, %v2430_v58 }
 0x212   : > { %v675_v40 = vmul.f32 %v2460_v17, %v631_v49  ;;  %v676_v42 = vmul.f32 %v2462_v5, %v632_v38  ;;  %v635_v27 = vmul.f32 %v1618_v43, %v2441_v20  ;;  %v636_v51 = vmul.f32 %v1618_v43, %v2444_v21 }
 0x213   : > { %v737_v45 = vpack.c.bf16 %v717_v55, %v715_v2  ;;  %v738_v15 = vpack.c.bf16 %v718_v35, %v716_v54  ;;  %v1620_v25 = vpop.eup %1619  ;;  %v677_v6 = vmul.f32 %v2460_v17, %v633_v24  ;;  %v678_v26 = vmul.f32 %v2462_v5, %v634_v14 }
 0x214   : > { %v719_v56 = vadd.f32 %v2464_v44, %v675_v40  ;;  %v720_v62 = vadd.f32 %v2468_v41, %v676_v42  ;;  %v637_v57 = vmul.f32 %v1620_v25, %v2447_v11  ;;  %v638_v58 = vmul.f32 %v1620_v25, %v2450_v16 }
 0x215   : > { %753 = vst [vmem:[#allocation2 + $0x50] sm:$0xff] %v737_v45  ;;  %754 = vst [vmem:[#allocation2 + $0x58] sm:$0xff] %v738_v15  ;;  %v721_v63 = vadd.f32 %v2464_v44, %v677_v6  ;;  %v722_v28 = vadd.f32 %v2468_v41, %v678_v26  ;;  %v679_v46 = vmul.f32 %v2460_v17, %v635_v27 }
 0x216   : > { %v680_v20 = vmul.f32 %v2462_v5, %v636_v51  ;;  %v681_v21 = vmul.f32 %v2460_v17, %v637_v57  ;;  %v682_v12 = vmul.f32 %v2462_v5, %v638_v58 }
 0x217   : > { %v739_v13 = vpack.c.bf16 %v721_v63, %v719_v56  ;;  %v740_v3 = vpack.c.bf16 %v722_v28, %v720_v62  ;;  %v723_v4 = vadd.f32 %v2464_v44, %v679_v46 }
 0x218   : > { %v724_v11 = vadd.f32 %v2468_v41, %v680_v20  ;;  %v725_v16 = vadd.f32 %v2464_v44, %v681_v21  ;;  %v726_v30 = vadd.f32 %v2468_v41, %v682_v12 }
 0x219   : > { %755 = vst [vmem:[#allocation2 + $0x60] sm:$0xff] %v739_v13  ;;  %756 = vst [vmem:[#allocation2 + $0x68] sm:$0xff] %v740_v3 }
 0x21a   : > { %v741_v31 = vpack.c.bf16 %v725_v16, %v723_v4  ;;  %v742_v47 = vpack.c.bf16 %v726_v30, %v724_v11 }
 0x21c   : > { %757 = vst [vmem:[#allocation2 + $0x70] sm:$0xff] %v741_v31  ;;  %758 = vst [vmem:[#allocation2 + $0x78] sm:$0xff] %v742_v47 }
 0x21d PF: > { %v1621_v17 = vld [vmem:[%s2191_s23 + $0x4] ss:$8 sps:$4 sm:$0xff]   ;;  %v1623_v5 = vld [vmem:[%s2191_s23] ss:$8 sps:$4 sm:$0xff]   ;;  %v1624_v44 = vld [vmem:[%s2191_s23 + $0x14] ss:$8 sps:$4 sm:$0xff]   ;;  %v809_v57 = vlaneseq }
 0x21e   : > { %979 = vmatprep.subr.bf16.mxu0 %v1621_v17  ;;  %1451 = vmatprep.subr.bf16.mxu1 %v1621_v17  ;;  %v1626_v41 = vld [vmem:[%s2191_s23 + $0x10] ss:$8 sps:$4 sm:$0xff]   ;;  %v1627_v9 = vld [vmem:[%s2191_s23 + $0x24] ss:$8 sps:$4 sm:$0xff]   ;;  %v1629_v23 = vld [vmem:[%s2191_s23 + $0x20] ss:$8 sps:$4 sm:$0xff]  }
 0x21f   : > { %980 = vmatpush1.bf16.msra.mxu0 %v1623_v5  ;;  %1467 = vmatpush1.bf16.msra.mxu1 %v1623_v5  ;;  %v1630_v52 = vld [vmem:[%s2191_s23 + $0x34] ss:$8 sps:$4 sm:$0xff]   ;;  %v1632_v53 = vld [vmem:[%s2191_s23 + $0x30] ss:$8 sps:$4 sm:$0xff]   ;;  %v1633_v32 = vld [vmem:[%s2191_s23 + $0x44] ss:$8 sps:$4 sm:$0xff]  }
 0x220   : > { %981 = vmatprep.subr.bf16.mxu0 %v1624_v44  ;;  %1452 = vmatprep.subr.bf16.mxu1 %v1624_v44  ;;  %v1635_v33 = vld [vmem:[%s2191_s23 + $0x40] ss:$8 sps:$4 sm:$0xff]   ;;  %v1636_v50 = vld [vmem:[%s2191_s23 + $0x54] ss:$8 sps:$4 sm:$0xff]   ;;  %v1638_v59 = vld [vmem:[%s2191_s23 + $0x50] ss:$8 sps:$4 sm:$0xff]  }
 0x221   : > { %v1639_v60 = vld [vmem:[%s2191_s23 + $0x64] ss:$8 sps:$4 sm:$0xff]   ;;  %v1641_v18 = vld [vmem:[%s2191_s23 + $0x60] ss:$8 sps:$4 sm:$0xff]   ;;  %v1642_v19 = vld [vmem:[%s2191_s23 + $0x74] ss:$8 sps:$4 sm:$0xff]  }
 0x222   : > { %v760_v7 = vld [vmem:[#allocation2 + $0x8] sm:$0xff]  ;;  %v1644_v36 = vld [vmem:[%s2191_s23 + $0x70] ss:$8 sps:$4 sm:$0xff]   ;;  %v1648_v29 = vld [vmem:[%s2191_s23 + $0x94] ss:$8 sps:$4 sm:$0xff]   ;;  %v810_v58 = vshrl.u32 %v809_v57, 7 }
 0x223   : > { %982 = vmatpush1.bf16.msra.mxu0 %v1626_v41  ;;  %1468 = vmatpush1.bf16.msra.mxu1 %v1626_v41  ;;  %v768_v10 = vld [vmem:[#allocation2 + $0x48] sm:$0xff]  ;;  %v1650_v34 = vld [vmem:[%s2191_s23 + $0x90] ss:$8 sps:$4 sm:$0xff]   ;;  %v1654_v48 = vld [vmem:[%s2191_s23 + $0xb4] ss:$8 sps:$4 sm:$0xff]   ;;  %s1450_s24 = sshll.u32 %s1895_s21, 7 }
 0x224   : > { %983 = vmatprep.subr.bf16.mxu0 %v1627_v9  ;;  %1453 = vmatprep.subr.bf16.mxu1 %v1627_v9  ;;  %v1645_v37 = vld [vmem:[%s2191_s23 + $0x84] ss:$8 sps:$4 sm:$0xff]   ;;  %v1647_v61 = vld [vmem:[%s2191_s23 + $0x80] ss:$8 sps:$4 sm:$0xff]   ;;  %v1656_v22 = vld [vmem:[%s2191_s23 + $0xb0] ss:$8 sps:$4 sm:$0xff]  }
 0x225   : > { %1011 = vmatprep.mubr.bf16.mxu0 %v760_v7  ;;  %1051 = vmatprep.mubr.bf16.mxu1 %v768_v10  ;;  %v1651_v0 = vld [vmem:[%s2191_s23 + $0xa4] ss:$8 sps:$4 sm:$0xff]   ;;  %v1653_v1 = vld [vmem:[%s2191_s23 + $0xa0] ss:$8 sps:$4 sm:$0xff]   ;;  %v1660_v38 = vld [vmem:[%s2191_s23 + $0xd4] ss:$8 sps:$4 sm:$0xff]  }
 0x226   : > { %v1657_v8 = vld [vmem:[%s2191_s23 + $0xc4] ss:$8 sps:$4 sm:$0xff]   ;;  %v1659_v49 = vld [vmem:[%s2191_s23 + $0xc0] ss:$8 sps:$4 sm:$0xff]   ;;  %v1662_v39 = vld [vmem:[%s2191_s23 + $0xd0] ss:$8 sps:$4 sm:$0xff]  }
 0x227   : > { %984 = vmatpush1.bf16.msra.mxu0 %v1629_v23  ;;  %1469 = vmatpush1.bf16.msra.mxu1 %v1629_v23  ;;  %v1663_v2 = vld [vmem:[%s2191_s23 + $0xe4] ss:$8 sps:$4 sm:$0xff]   ;;  %v1665_v54 = vld [vmem:[%s2191_s23 + $0xe0] ss:$8 sps:$4 sm:$0xff]   ;;  %v1666_v55 = vld [vmem:[%s2191_s23 + $0xf4] ss:$8 sps:$4 sm:$0xff]  }
 0x228   : > { %985 = vmatprep.subr.bf16.mxu0 %v1630_v52  ;;  %1454 = vmatprep.subr.bf16.mxu1 %v1630_v52  ;;  %v1668_v35 = vld [vmem:[%s2191_s23 + $0xf0] ss:$8 sps:$4 sm:$0xff]   ;;  %v759_v40 = vld [vmem:[#allocation2] sm:$0xff]  ;;  %v764_v15 = vld [vmem:[#allocation2 + $0x28] sm:$0xff]  ;;  %v811_v63 = vsub.s32 0, %v810_v58  ;;  %v815_v46 = vsub.s32 1, %v810_v58 }
 0x229   : > { %v767_v42 = vld [vmem:[#allocation2 + $0x40] sm:$0xff]  ;;  %v762_v43 = vld [vmem:[#allocation2 + $0x18] sm:$0xff]  ;;  %v761_v14 = vld [vmem:[#allocation2 + $0x10] sm:$0xff]  ;;  %s1221_s28 = sshll.u32 %s2201_s8, 4  ;;  %s2760_s16 = sld [smem:[#allocation24_spill]]  ;;  %s2652_s28 = int_to_ptr.vmem [resolvable:$true] %s1221_s28 }
 0x22a   : > { %v770_v24 = vld [vmem:[#allocation2 + $0x58] sm:$0xff]  ;;  %v769_v45 = vld [vmem:[#allocation2 + $0x50] sm:$0xff]  ;;  %v772_v25 = vld [vmem:[#allocation2 + $0x68] sm:$0xff]  ;;  %s1205_s10 = scalar_lea.sflag [#allocation5], %s2188_s26  ;;  %s1813_s14 = scalar_lea.vmem %s2652_s28, 2048 }
 0x22b   : > { %986 = vmatpush1.bf16.msra.mxu0 %v1632_v53  ;;  %1470 = vmatpush1.bf16.msra.mxu1 %v1632_v53  ;;  %v763_v6 = vld [vmem:[#allocation2 + $0x20] sm:$0xff]  ;;  %v766_v27 = vld [vmem:[#allocation2 + $0x38] sm:$0xff]  ;;  %v765_v56 = vld [vmem:[#allocation2 + $0x30] sm:$0xff]  ;;  %p1814_p10 = scmp.ne.s32.totalorder %s2652_s28, %s1813_s14  ;;  %p2761_p11 = scmp.ne.s32.totalorder %s2733_s29, 0 }
 0x22c   : > { %987 = vmatprep.subr.bf16.mxu0 %v1633_v32  ;;  %1455 = vmatprep.subr.bf16.mxu1 %v1633_v32  ;;  %v771_v26 = vld [vmem:[#allocation2 + $0x60] sm:$0xff]  ;;  %v774_v51 = vld [vmem:[#allocation2 + $0x78] sm:$0xff]  ;;  %v773_v62 = vld [vmem:[#allocation2 + $0x70] sm:$0xff]  ;;  %s1915_s17 = smov [#allocation12]  }
 0x22d   : > { %v807_v28 = vld [vmem:[%s2199_s11] sm:$0x3]  ;;  %p1815_p6 = pnand %p1814_p10, %p2761_p11  ;;  %s1817_s18 = sshll.u32 %s1915_s17, 4  ;;  %s1818_s18 = int_to_ptr.vmem [resolvable:$false] %s1817_s18 }
 0x22e   : > { %v2597_v20 = vrot.slane %v807_v28, %v811_v63  ;;  %v2599_v21 = vrot.slane %v807_v28, %v815_v46  ;;  %s1819_s12 = scalar_lea.vmem %s1818_s18, 4096  ;;  %p1820_p4 = scmp.lt.s32.totalorder %s2652_s28, %s1818_s18 }
 0x22f   : > { %988 = vmatpush1.bf16.msra.mxu0 %v1635_v33  ;;  %1471 = vmatpush1.bf16.msra.mxu1 %v1635_v33  ;;  %s2650_s7 = scalar_lea.hbm %s2760_s16, %s1450_s24  ;;  %p1816_p12 = pneg %p1815_p6 }
 0x230   : > { %989 = vmatprep.subr.bf16.mxu0 %v1636_v50  ;;  %1456 = vmatprep.subr.bf16.mxu1 %v1636_v50  ;;  %p1821_p0 = scmp.lt.s32.totalorder %s1819_s12, %s1813_s14 }
 0x232   : > { %p1822_p2 = por %p1821_p0, %p1820_p4 }
 0x233   : > { %990 = vmatpush1.bf16.msra.mxu0 %v1638_v59  ;;  %1472 = vmatpush1.bf16.msra.mxu1 %v1638_v59 }
 0x234   : > { %991 = vmatprep.subr.bf16.mxu0 %v1639_v60  ;;  %1457 = vmatprep.subr.bf16.mxu1 %v1639_v60  ;;  %p1823_p13 = pnand %p1822_p2, %p1816_p12 }
 0x237   : > { %992 = vmatpush1.bf16.msra.mxu0 %v1641_v18  ;;  %1473 = vmatpush1.bf16.msra.mxu1 %v1641_v18 }
 0x238   : > { %993 = vmatprep.subr.bf16.mxu0 %v1642_v19  ;;  %1458 = vmatprep.subr.bf16.mxu1 %v1642_v19 }
 0x23b   : > { %994 = vmatpush1.bf16.msra.mxu0 %v1644_v36  ;;  %1474 = vmatpush1.bf16.msra.mxu1 %v1644_v36 }
 0x23c   : > { %995 = vmatprep.subr.bf16.mxu0 %v1645_v37  ;;  %1459 = vmatprep.subr.bf16.mxu1 %v1645_v37 }
 0x23f   : > { %996 = vmatpush1.bf16.msra.mxu0 %v1647_v61  ;;  %1475 = vmatpush1.bf16.msra.mxu1 %v1647_v61 }
 0x240   : > { %997 = vmatprep.subr.bf16.mxu0 %v1648_v29  ;;  %1460 = vmatprep.subr.bf16.mxu1 %v1648_v29 }
 0x243   : > { %998 = vmatpush1.bf16.msra.mxu0 %v1650_v34  ;;  %1476 = vmatpush1.bf16.msra.mxu1 %v1650_v34 }
 0x244   : > { %999 = vmatprep.subr.bf16.mxu0 %v1651_v0  ;;  %1461 = vmatprep.subr.bf16.mxu1 %v1651_v0 }
 0x247   : > { %1000 = vmatpush1.bf16.msra.mxu0 %v1653_v1  ;;  %1477 = vmatpush1.bf16.msra.mxu1 %v1653_v1 }
 0x248   : > { %1001 = vmatprep.subr.bf16.mxu0 %v1654_v48  ;;  %1462 = vmatprep.subr.bf16.mxu1 %v1654_v48 }
 0x24b   : > { %1002 = vmatpush1.bf16.msra.mxu0 %v1656_v22  ;;  %1478 = vmatpush1.bf16.msra.mxu1 %v1656_v22 }
 0x24c   : > { %1003 = vmatprep.subr.bf16.mxu0 %v1657_v8  ;;  %1463 = vmatprep.subr.bf16.mxu1 %v1657_v8 }
 0x24f   : > { %1004 = vmatpush1.bf16.msra.mxu0 %v1659_v49  ;;  %1479 = vmatpush1.bf16.msra.mxu1 %v1659_v49 }
 0x250   : > { %1005 = vmatprep.subr.bf16.mxu0 %v1660_v38  ;;  %1464 = vmatprep.subr.bf16.mxu1 %v1660_v38 }
 0x253   : > { %1006 = vmatpush1.bf16.msra.mxu0 %v1662_v39  ;;  %1480 = vmatpush1.bf16.msra.mxu1 %v1662_v39 }
 0x254   : > { %1007 = vmatprep.subr.bf16.mxu0 %v1663_v2  ;;  %1465 = vmatprep.subr.bf16.mxu1 %v1663_v2 }
 0x257   : > { %1008 = vmatpush1.bf16.msra.mxu0 %v1665_v54  ;;  %1481 = vmatpush1.bf16.msra.mxu1 %v1665_v54 }
 0x258   : > { %1009 = vmatprep.subr.bf16.mxu0 %v1666_v55  ;;  %1466 = vmatprep.subr.bf16.mxu1 %v1666_v55 }
 0x25b   : > { %1010 = vmatpush1.bf16.msra.mxu0 %v1668_v35  ;;  %1482 = vmatpush1.bf16.msra.mxu1 %v1668_v35 }
 0x25e   : > { %1012 = vmatmul.mubr.bf16.vlgmr.msra.gmra.mrb[0].mxu0 %v759_v40  ;;  %1052 = vmatmul.mubr.bf16.vlgmr.msra.gmra.mrb[0].mxu1 %v767_v42 }
 0x25f   : > { %1021 = vmatprep.mubr.bf16.mxu0 %v762_v43  ;;  %1061 = vmatprep.mubr.bf16.mxu1 %v770_v24 }
 0x266   : > { %1022 = vmatmul.mubr.bf16.gmra.mrb[4].mxu0 %v761_v14  ;;  %1062 = vmatmul.mubr.bf16.gmra.mrb[4].mxu1 %v769_v45 }
 0x267   : > { %1031 = vmatprep.mubr.bf16.mxu0 %v764_v15  ;;  %1071 = vmatprep.mubr.bf16.mxu1 %v772_v25 }
 0x26e   : > { %1032 = vmatmul.mubr.bf16.gmra.mrb[8].mxu0 %v763_v6  ;;  %1072 = vmatmul.mubr.bf16.gmra.mrb[8].mxu1 %v771_v26 }
 0x26f   : > { %1041 = vmatprep.mubr.bf16.mxu0 %v766_v27  ;;  %1081 = vmatprep.mubr.bf16.mxu1 %v774_v51 }
 0x276   : > { %1042 = vmatmul.mubr.bf16.gmra.mrb[12].mxu0 %v765_v56  ;;  %1082 = vmatmul.mubr.bf16.gmra.mrb[12].mxu1 %v773_v62 }
 0x331   : > { %v1013_v12 = vpop.f32.mrb[0].mxu0  ;;  %v1053_v13 = vpop.f32.mrb[0].mxu1 }
 0x332   : > { %v1014_v3 = vadd.f32 %v1013_v12, %v2597_v20  ;;  %v1054_v4 = vadd.f32 %v1053_v13, %v2597_v20  ;;  %v1015_v11 = vpop.f32.mrb[1].mxu0  ;;  %v1055_v16 = vpop.f32.mrb[1].mxu1 }
 0x333   : > { %v1016_v30 = vadd.f32 %v1015_v11, %v2599_v21  ;;  %v1056_v31 = vadd.f32 %v1055_v16, %v2599_v21  ;;  %v1017_v47 = vpop.f32.mrb[2].mxu0  ;;  %v1057_v17 = vpop.f32.mrb[2].mxu1 }
 0x334   : > { %v1018_v5 = vadd.f32 %v1017_v47, %v2597_v20  ;;  %v1058_v44 = vadd.f32 %v1057_v17, %v2597_v20  ;;  %v1019_v41 = vpop.f32.mrb[3].mxu0  ;;  %v1059_v9 = vpop.f32.mrb[3].mxu1 }
 0x335   : > { %v1434_v23 = vpack.c.bf16 %v1016_v30, %v1014_v3  ;;  %v1442_v52 = vpack.c.bf16 %v1056_v31, %v1054_v4  ;;  %v1020_v53 = vadd.f32 %v1019_v41, %v2599_v21  ;;  %v1060_v32 = vadd.f32 %v1059_v9, %v2599_v21 }
 0x337   : > { %1188 = vst [vmem:[%s2201_s8] sm:$0xff] %v1434_v23  ;;  %1196 = vst [vmem:[%s2201_s8 + $0x40] sm:$0xff] %v1442_v52  ;;  %v1435_v33 = vpack.c.bf16 %v1020_v53, %v1018_v5  ;;  %v1443_v50 = vpack.c.bf16 %v1060_v32, %v1058_v44 }
 0x339   : > { %1189 = vst [vmem:[%s2201_s8 + $0x8] sm:$0xff] %v1435_v33  ;;  %1197 = vst [vmem:[%s2201_s8 + $0x48] sm:$0xff] %v1443_v50  ;;  %v1023_v59 = vpop.f32.mrb[4].mxu0  ;;  %v1063_v60 = vpop.f32.mrb[4].mxu1 }
 0x33a   : > { %v1024_v7 = vadd.f32 %v1023_v59, %v2597_v20  ;;  %v1064_v10 = vadd.f32 %v1063_v60, %v2597_v20  ;;  %v1025_v18 = vpop.f32.mrb[5].mxu0  ;;  %v1065_v19 = vpop.f32.mrb[5].mxu1 }
 0x33b   : > { %v1026_v36 = vadd.f32 %v1025_v18, %v2599_v21  ;;  %v1066_v37 = vadd.f32 %v1065_v19, %v2599_v21  ;;  %v1027_v61 = vpop.f32.mrb[6].mxu0  ;;  %v1067_v29 = vpop.f32.mrb[6].mxu1 }
 0x33c   : > { %v1028_v34 = vadd.f32 %v1027_v61, %v2597_v20  ;;  %v1068_v0 = vadd.f32 %v1067_v29, %v2597_v20  ;;  %v1029_v1 = vpop.f32.mrb[7].mxu0  ;;  %v1069_v48 = vpop.f32.mrb[7].mxu1 }
 0x33d   : > { %v1436_v22 = vpack.c.bf16 %v1026_v36, %v1024_v7  ;;  %v1444_v8 = vpack.c.bf16 %v1066_v37, %v1064_v10  ;;  %v1030_v49 = vadd.f32 %v1029_v1, %v2599_v21  ;;  %v1070_v38 = vadd.f32 %v1069_v48, %v2599_v21 }
 0x33f   : > { %1190 = vst [vmem:[%s2201_s8 + $0x10] sm:$0xff] %v1436_v22  ;;  %1198 = vst [vmem:[%s2201_s8 + $0x50] sm:$0xff] %v1444_v8  ;;  %v1437_v39 = vpack.c.bf16 %v1030_v49, %v1028_v34  ;;  %v1445_v2 = vpack.c.bf16 %v1070_v38, %v1068_v0 }
 0x341   : > { %1191 = vst [vmem:[%s2201_s8 + $0x18] sm:$0xff] %v1437_v39  ;;  %1199 = vst [vmem:[%s2201_s8 + $0x58] sm:$0xff] %v1445_v2  ;;  %v1033_v54 = vpop.f32.mrb[8].mxu0  ;;  %v1073_v55 = vpop.f32.mrb[8].mxu1 }
 0x342   : > { %v1034_v35 = vadd.f32 %v1033_v54, %v2597_v20  ;;  %v1074_v40 = vadd.f32 %v1073_v55, %v2597_v20  ;;  %v1035_v42 = vpop.f32.mrb[9].mxu0  ;;  %v1075_v43 = vpop.f32.mrb[9].mxu1 }
 0x343   : > { %v1036_v24 = vadd.f32 %v1035_v42, %v2599_v21  ;;  %v1076_v14 = vadd.f32 %v1075_v43, %v2599_v21  ;;  %v1037_v45 = vpop.f32.mrb[10].mxu0  ;;  %v1077_v15 = vpop.f32.mrb[10].mxu1 }
 0x344   : > { %v1038_v25 = vadd.f32 %v1037_v45, %v2597_v20  ;;  %v1078_v6 = vadd.f32 %v1077_v15, %v2597_v20  ;;  %v1039_v26 = vpop.f32.mrb[11].mxu0  ;;  %v1079_v27 = vpop.f32.mrb[11].mxu1 }
 0x345   : > { %v1438_v51 = vpack.c.bf16 %v1036_v24, %v1034_v35  ;;  %v1446_v56 = vpack.c.bf16 %v1076_v14, %v1074_v40  ;;  %v1040_v62 = vadd.f32 %v1039_v26, %v2599_v21  ;;  %v1080_v57 = vadd.f32 %v1079_v27, %v2599_v21 }
 0x347   : > { %1192 = vst [vmem:[%s2201_s8 + $0x20] sm:$0xff] %v1438_v51  ;;  %1200 = vst [vmem:[%s2201_s8 + $0x60] sm:$0xff] %v1446_v56  ;;  %v1439_v58 = vpack.c.bf16 %v1040_v62, %v1038_v25  ;;  %v1447_v63 = vpack.c.bf16 %v1080_v57, %v1078_v6 }
 0x349   : > { %1193 = vst [vmem:[%s2201_s8 + $0x28] sm:$0xff] %v1439_v58  ;;  %1201 = vst [vmem:[%s2201_s8 + $0x68] sm:$0xff] %v1447_v63  ;;  %v1043_v28 = vpop.f32.mrb[12].mxu0  ;;  %v1083_v46 = vpop.f32.mrb[12].mxu1 }
 0x34a   : > { %v1044_v12 = vadd.f32 %v1043_v28, %v2597_v20  ;;  %v1084_v13 = vadd.f32 %v1083_v46, %v2597_v20  ;;  %v1045_v3 = vpop.f32.mrb[13].mxu0  ;;  %v1085_v4 = vpop.f32.mrb[13].mxu1 }
 0x34b   : > { %v1046_v11 = vadd.f32 %v1045_v3, %v2599_v21  ;;  %v1086_v16 = vadd.f32 %v1085_v4, %v2599_v21  ;;  %v1047_v30 = vpop.f32.mrb[14].mxu0  ;;  %v1087_v31 = vpop.f32.mrb[14].mxu1 }
 0x34c   : > { %v1048_v47 = vadd.f32 %v1047_v30, %v2597_v20  ;;  %v1088_v17 = vadd.f32 %v1087_v31, %v2597_v20  ;;  %v1049_v5 = vpop.f32.mrb[15].mxu0  ;;  %v1089_v44 = vpop.f32.mrb[15].mxu1 }
 0x34d   : > { %v1440_v41 = vpack.c.bf16 %v1046_v11, %v1044_v12  ;;  %v1448_v9 = vpack.c.bf16 %v1086_v16, %v1084_v13  ;;  %v1050_v23 = vadd.f32 %v1049_v5, %v2599_v21  ;;  %v1090_v52 = vadd.f32 %v1089_v44, %v2599_v21 }
 0x34f   : > { %1194 = vst [vmem:[%s2201_s8 + $0x30] sm:$0xff] %v1440_v41  ;;  %1202 = vst [vmem:[%s2201_s8 + $0x70] sm:$0xff] %v1448_v9  ;;  %v1441_v20 = vpack.c.bf16 %v1050_v23, %v1048_v47  ;;  %v1449_v53 = vpack.c.bf16 %v1090_v52, %v1088_v17 }
 0x351   : > { %1195 = vst [vmem:[%s2201_s8 + $0x38] sm:$0xff] %v1441_v20  ;;  %1203 = vst [vmem:[%s2201_s8 + $0x78] sm:$0xff] %v1449_v53 }
 0x352   : > { %1826 = shalt.err (!%p1823_p13)
}
 0x353   : > { %s1827_s25 = scalar_lea.hbm %s2650_s7, 2048  ;;  %s1831_s13 = scalar_lea.hbm %s2760_s16, 6144 }
 0x354   : > { %p1828_p3 = scmp.ne.s32.totalorder %s2650_s7, %s1827_s25  ;;  %p1832_p1 = scmp.lt.u32.totalorder %s2650_s7, %s2760_s16 }
 0x355   : > { %p1833_p9 = scmp.lt.u32.totalorder %s1831_s13, %s1827_s25  ;;  %p1835_p10 = scmp.lt.u32.totalorder %s1827_s25, %s2650_s7 }
 0x356   : > { %p1829_p7 = pnand %p1828_p3, %p2761_p11 }
 0x357   : > { %p1834_p5 = por %p1833_p9, %p1832_p1 }
 0x358   : > { %p1830_p8 = pneg %p1829_p7 }
 0x359   : > { %p1836_p6 = por %p1835_p10, %p1834_p5 }
 0x35b   : > { %p1837_p12 = pnand %p1836_p6, %p1830_p8 }
 0x35d   : > { %1840 = shalt.err (!%p1837_p12)
}
 0x35e   : > { %s1916_s1 = smov 128   ;;  %s1917_s23 = smov 384  }
 0x35f   : > { %s1918_s3 = smov 8  }
 0x360   : > { %1499 = dma.vmem_to_hbm [thread:$0]  (%p2761_p11), %s2652_s28, 2048, %s2650_s7, %s1205_s10, %s1916_s1, %s1917_s23, %s1918_s3  }
 0x361 PF: > { %s2762_s5 = sld [smem:[#allocation18_spill]]  ;;  %s2763_s11 = sld [smem:[#allocation17_spill]] }
 0x362   : > { %s2764_s8 = sld [smem:[#allocation19_spill]] }
 0x367   : > { %p1529_p4 = scmp.ge.s32.totalorder %s2762_s5, 2  ;;  %s1236_s24 = sand.u32 1, %s2763_s11  }
 0x368   : > { %p2765_p0 = scmp.ne.s32.totalorder %s2764_s8, 0  ;;  %s1237_s21 = scalar_lea.sflag [#allocation5], %s1236_s24 }
 0x36a   : > { %p1519_p2 = pnand %p1529_p4, %p2765_p0 }
 0x36c   : > { %1878 = dma.done.wait (!%p1519_p2), %s1237_s21, 2048  }
 0x36d   : > { %1880 = vsyncadd (!%p1519_p2), %s1237_s21, 4294965248  ;;  %s23_s23 = sadd.s32 1, %s2762_s5   ;;  %s2766_s27 = sld [smem:[#allocation21_spill]] }
 0x36e   : > { %p20_p13 = scmp.ge.s32.totalorder %s23_s23, 5   ;;  %s2767_s29 = sld [smem:[#allocation20_spill]] }
 0x36f   : > { %s2768_s18 = smov %s1887_s19  ;;  %s2769_s19 = smov %s1891_s20 }
 0x370   : > { %s2771_s21 = smov %s1899_s22  ;;  %22 = sbr.rel (!%p20_p13) target bundleno = 12 (0xc), region = 114 }
 0x373   : > { %s2770_s20 = smov %s2766_s27 }
 0x374   : > { %s2772_s22 = smov %s2767_s29 }
 0x377   :  { %1242 = vsyncpa [#allocation4], 1 }
 0x378   :  { %1244 = vsyncpa [#allocation4 + $0x1], 1 }
 0x379   :  { %1245 = vsyncpa [#allocation7], 1 }
 0x37a   :  { %1246 = vsyncpa [#allocation10], 1 }
 0x37b   :  { %1248 = vsyncpa [#allocation10 + $0x1], 1 }
 0x37c   :  { %1249 = vsyncpa [#allocation5], 1 }
 0x37d   :  { %1251 = vsyncpa [#allocation5 + $0x1], 1 }

</bundles_post_ra>
